<compile_context>
chip_gen: v7x
topology: tpu7x:2x2x1
jax: 0.10.0
libtpu: 0.0.40
codegen_flags: <defaults>
</compile_context>

<pallas_src>
import math
import jax
import jax.numpy as jnp
from jax import lax
from jax.experimental import pallas as pl
from jax.experimental.pallas import tpu as pltpu

# ----------------------------- configuration -------------------------------
ITEM_SIZE = 50          # args.item_size
HIDDEN = 32             # args.hidden_size
MAX_SEQ = 8             # args.max_seq_length
HEADS = 2               # args.num_attention_heads
HEAD_DIM = HIDDEN // HEADS
INTER = 4 * HIDDEN      # intermediate size of the FFN
LAYERS = 2              # args.num_hidden_layers
INIT_RANGE = 0.02       # args.initializer_range
EPS = 1e-12
BATCH = 2
SEQ = 8
TAB_PAD = 64            # item table padded to a multiple of 8 rows for the MXU

_VMEM = pl.BlockSpec(memory_space=pltpu.MemorySpace.VMEM)


def _layernorm(x, w, b):
    # Matches the SASRec LayerNorm: mean/biased-var over last axis, eps inside sqrt.
    u = jnp.mean(x, axis=-1, keepdims=True)
    s = jnp.mean((x - u) * (x - u), axis=-1, keepdims=True)
    return (x - u) * lax.rsqrt(s + EPS) * w + b


# --------------------------- fused Pallas kernel ----------------------------
def sasrec_fused_kernel(ids_ref, tab_ref, pos_ref, embln_ref,
                        wqkv_ref, wo_ref, w1_ref, w2_ref, small_ref,
                        out_ref, ctx_ref):
    H = HIDDEN
    ids = ids_ref[...]                                   # (B, S) int32
    B, S = ids.shape
    TAB = tab_ref.shape[0]

    # ---- additive attention mask: causal AND key-is-not-padding -----------
    valid = (ids > 0).astype(jnp.float32)                              # (B, S)
    qpos = lax.broadcasted_iota(jnp.int32, (S, S), 0)
    kpos = lax.broadcasted_iota(jnp.int32, (S, S), 1)
    causal = (qpos >= kpos).astype(jnp.float32)                        # (S, S)
    mask = (1.0 - valid[:, None, :] * causal[None, :, :]) * -10000.0   # (B, S, S)

    # ---- embedding lookup as a one-hot matmul (no XLA gather) -------------
    iota_it = lax.broadcasted_iota(jnp.int32, (B, S, TAB), 2)
    onehot = (iota_it == ids[:, :, None]).astype(jnp.float32)          # (B, S, TAB)
    onehot = onehot.reshape(B * S, TAB)
    item = jnp.dot(onehot, tab_ref[...],
                   preferred_element_type=jnp.float32)                 # (BS, H)
    pos = jnp.tile(pos_ref[...], (B, 1))                               # (BS, H)

    emb_w = embln_ref[0:1, :]
    emb_b = embln_ref[1:2, :]
    h = _layernorm(item + pos, emb_w, emb_b)                           # (BS, H)
    # TODO(synk): dropout (training mode) not implemented — eval-mode identity.

    scale = 1.0 / math.sqrt(HEAD_DIM)
    for l in range(LAYERS):                      # static unroll, LAYERS = 2
        wqkv = wqkv_ref[l]                       # (H, 3H)
        wo = wo_ref[l]                           # (H, H)
        w1 = w1_ref[l]                           # (H, INTER)
        w2 = w2_ref[l]                           # (INTER, H)
        sp = small_ref[l]                        # (8, 128) packed small params
        b_qkv = sp[0:1, :3 * H]
        b_o   = sp[1:2, :H]
        ln1w  = sp[2:3, :H]
        ln1b  = sp[3:4, :H]
        b1    = sp[4:5, :INTER]
        b2    = sp[5:6, :H]
        ln2w  = sp[6:7, :H]
        ln2b  = sp[7:8, :H]

        # fused QKV projection: one (BS,H)x(H,3H) MXU op
        qkv = jnp.dot(h, wqkv, preferred_element_type=jnp.float32) + b_qkv
        q = qkv[:, 0:H].reshape(B, S, H)
        k = qkv[:, H:2 * H].reshape(B, S, H)
        v = qkv[:, 2 * H:3 * H].reshape(B, S, H)

        # per-head attention, batched over B; head results go straight into
        # the VMEM ctx scratch at their static lane slice (no lane concat).
        for hh in range(HEADS):                  # static unroll, HEADS = 2
            lo = hh * HEAD_DIM
            hi = lo + HEAD_DIM
            qh = q[:, :, lo:hi]                  # (B, S, D)
            kh = k[:, :, lo:hi]
            vh = v[:, :, lo:hi]
            s_ = jnp.einsum('bqd,bkd->bqk', qh, kh,
                            preferred_element_type=jnp.float32) * scale + mask
            s_ = s_ - jnp.max(s_, axis=-1, keepdims=True)
            e = jnp.exp(s_)
            p = e * pl.reciprocal(jnp.sum(e, axis=-1, keepdims=True), approx=True)
            ctx_ref[:, :, lo:hi] = jnp.einsum('bqk,bkd->bqd', p, vh,
                                              preferred_element_type=jnp.float32)

        ctx = ctx_ref[...].reshape(B * S, H)
        attn = jnp.dot(ctx, wo, preferred_element_type=jnp.float32) + b_o
        h1 = _layernorm(attn + h, ln1w, ln1b)

        f = jnp.dot(h1, w1, preferred_element_type=jnp.float32) + b1
        f = 0.5 * f * (1.0 + lax.erf(f * (1.0 / math.sqrt(2.0))))      # exact gelu
        f2 = jnp.dot(f, w2, preferred_element_type=jnp.float32) + b2
        h = _layernorm(f2 + h1, ln2w, ln2b)

    out_ref[...] = h            # (B*S, H); free metadata reshape in wrapper


# ------------------------------ wrappers ------------------------------------
def sasrec_forward(params, input_ids):
    B, S = input_ids.shape
    out_flat = pl.pallas_call(
        sasrec_fused_kernel,
        out_shape=jax.ShapeDtypeStruct((B * S, HIDDEN), jnp.float32),
        in_specs=[_VMEM] * 9,
        out_specs=_VMEM,
        scratch_shapes=[pltpu.VMEM((B, S, HIDDEN), jnp.float32)],
    )(input_ids.astype(jnp.int32),
      params["tab"], params["pos"][:S], params["emb_ln"],
      params["w_qkv"], params["w_o"], params["w_ff1"], params["w_ff2"],
      params["small"])
    return out_flat.reshape(B, S, HIDDEN)


def init_params(key):
    """Deterministic init matching SASRecModel.init_weights:
       normal(0, 0.02) for embeddings/linears, zero biases, LN weight=1/bias=0.
       Weights are pre-transposed to (in, out) and packed for the fused kernel."""
    keys = jax.random.split(key, 2 + LAYERS * 6)

    def nrm(k, shape):
        return (INIT_RANGE * jax.random.normal(k, shape)).astype(jnp.float32)

    item_emb = nrm(keys[0], (ITEM_SIZE, HIDDEN))
    pos_emb = nrm(keys[1], (MAX_SEQ, HIDDEN))
    tab = jnp.zeros((TAB_PAD, HIDDEN), jnp.float32).at[:ITEM_SIZE].set(item_emb)
    emb_ln = jnp.stack([jnp.ones((HIDDEN,), jnp.float32),
                        jnp.zeros((HIDDEN,), jnp.float32)], axis=0)    # (2, H)

    w_qkv, w_o, w_ff1, w_ff2, small = [], [], [], [], []
    for l in range(LAYERS):
        kq, kk, kv, ko, k1, k2 = keys[2 + l * 6: 2 + (l + 1) * 6]
        wq = nrm(kq, (HIDDEN, HIDDEN)).T
        wk = nrm(kk, (HIDDEN, HIDDEN)).T
        wv = nrm(kv, (HIDDEN, HIDDEN)).T
        wo = nrm(ko, (HIDDEN, HIDDEN)).T
        w1 = nrm(k1, (INTER, HIDDEN)).T          # (H, INTER)
        w2 = nrm(k2, (HIDDEN, INTER)).T          # (INTER, H)
        w_qkv.append(jnp.concatenate([wq, wk, wv], axis=1))            # (H, 3H)
        w_o.append(wo)
        w_ff1.append(w1)
        w_ff2.append(w2)

        # pack all small per-layer params into one (8, 128) slab:
        # row 0: b_qkv(3H) | 1: b_o(H) | 2: ln1_w | 3: ln1_b |
        # row 4: b_ff1(INTER) | 5: b_ff2(H) | 6: ln2_w | 7: ln2_b
        sp = jnp.zeros((8, 128), jnp.float32)
        sp = sp.at[2, :HIDDEN].set(1.0)          # ln1 weight
        sp = sp.at[6, :HIDDEN].set(1.0)          # ln2 weight
        small.append(sp)                         # biases/LN-biases are zero

    return {
        "tab": tab,
        "pos": pos_emb,
        "emb_ln": emb_ln,
        "w_qkv": jnp.stack(w_qkv),               # (L, H, 3H)
        "w_o": jnp.stack(w_o),                   # (L, H, H)
        "w_ff1": jnp.stack(w_ff1),               # (L, H, INTER)
        "w_ff2": jnp.stack(w_ff2),               # (L, INTER, H)
        "small": jnp.stack(small),               # (L, 8, 128)
    }


if __name__ == "__main__":
    key = jax.random.PRNGKey(0)
    pkey, dkey = jax.random.split(key)
    params = init_params(pkey)

    # deterministic example input: item ids in [0, ITEM_SIZE), 0 == padding
    input_ids = jax.random.randint(dkey, (BATCH, SEQ), 0, ITEM_SIZE, dtype=jnp.int32)
    input_ids = input_ids.at[0, :2].set(0)   # some padding positions

    out = sasrec_forward(params, input_ids)
    out = jax.block_until_ready(out)
    assert out.shape == (BATCH, SEQ, HIDDEN) and out.dtype == jnp.float32
    assert bool(jnp.all(jnp.isfinite(out)))
    print("KERNEL_OK")
</pallas_src>

<mosaic_0001>
module attributes {stable_mosaic.version = 11 : i64} {
  func.func @sasrec_fused_kernel(%arg0: memref<2x8xi32, #tpu.memory_space<vmem>>, %arg1: memref<64x32xf32, #tpu.memory_space<vmem>>, %arg2: memref<8x32xf32, #tpu.memory_space<vmem>>, %arg3: memref<2x32xf32, #tpu.memory_space<vmem>>, %arg4: memref<2x32x96xf32, #tpu.memory_space<vmem>>, %arg5: memref<2x32x32xf32, #tpu.memory_space<vmem>>, %arg6: memref<2x32x128xf32, #tpu.memory_space<vmem>>, %arg7: memref<2x128x32xf32, #tpu.memory_space<vmem>>, %arg8: memref<2x8x128xf32, #tpu.memory_space<vmem>>, %arg9: memref<16x32xf32, #tpu.memory_space<vmem>>, %arg10: memref<2x8x32xf32, #tpu.memory_space<vmem>>) attributes {dimension_semantics = [], scalar_prefetch = 0 : i64, scratch_operands = 1 : i64, tpu.core_type = #tpu.core_type<tc>} {
    %c0 = arith.constant 0 : index
    %c0_0 = arith.constant 0 : index
    %0 = vector.load %arg0[%c0, %c0_0] : memref<2x8xi32, #tpu.memory_space<vmem>>, vector<2x8xi32>
    %c0_i32 = arith.constant 0 : i32
    %1 = vector.broadcast %c0_i32 : i32 to vector<2x8xi32>
    %2 = arith.cmpi sgt, %0, %1 : vector<2x8xi32>
    %3 = arith.extui %2 : vector<2x8xi1> to vector<2x8xi32>
    %4 = arith.sitofp %3 : vector<2x8xi32> to vector<2x8xf32>
    %5 = tpu.iota {dimensions = array<i32: 0>} : vector<8x8xi32>
    %6 = tpu.iota {dimensions = array<i32: 1>} : vector<8x8xi32>
    %7 = arith.cmpi sge, %5, %6 : vector<8x8xi32>
    %8 = arith.extui %7 : vector<8x8xi1> to vector<8x8xi32>
    %9 = arith.sitofp %8 : vector<8x8xi32> to vector<8x8xf32>
    %10 = vector.shape_cast %4 : vector<2x8xf32> to vector<2x1x8xf32>
    %11 = vector.shape_cast %9 : vector<8x8xf32> to vector<1x8x8xf32>
    %12 = vector.broadcast %10 : vector<2x1x8xf32> to vector<2x8x8xf32>
    %13 = vector.broadcast %11 : vector<1x8x8xf32> to vector<2x8x8xf32>
    %14 = arith.mulf %12, %13 : vector<2x8x8xf32>
    %cst = arith.constant 1.000000e+00 : f32
    %15 = vector.broadcast %cst : f32 to vector<2x8x8xf32>
    %16 = arith.subf %15, %14 : vector<2x8x8xf32>
    %cst_1 = arith.constant -1.000000e+04 : f32
    %17 = vector.broadcast %cst_1 : f32 to vector<2x8x8xf32>
    %18 = arith.mulf %16, %17 : vector<2x8x8xf32>
    %19 = tpu.iota {dimensions = array<i32: 2>} : vector<2x8x64xi32>
    %20 = vector.shape_cast %0 : vector<2x8xi32> to vector<2x8x1xi32>
    %21 = vector.broadcast %20 : vector<2x8x1xi32> to vector<2x8x64xi32>
    %22 = arith.cmpi eq, %19, %21 : vector<2x8x64xi32>
    %23 = arith.extui %22 : vector<2x8x64xi1> to vector<2x8x64xi32>
    %24 = arith.sitofp %23 : vector<2x8x64xi32> to vector<2x8x64xf32>
    %25 = vector.shape_cast %24 : vector<2x8x64xf32> to vector<16x64xf32>
    %c0_2 = arith.constant 0 : index
    %c0_3 = arith.constant 0 : index
    %26 = vector.load %arg1[%c0_2, %c0_3] : memref<64x32xf32, #tpu.memory_space<vmem>>, vector<64x32xf32>
    %cst_4 = arith.constant dense<0.000000e+00> : vector<16x32xf32>
    %27 = tpu.matmul %25, %26, %cst_4 {dimension_numbers = #tpu.dot_dimension_numbers<[1], [0], [0], [1], [0, 0, 1, 1], [], []>} : vector<16x64xf32>, vector<64x32xf32>, vector<16x32xf32> -> vector<16x32xf32>
    %c0_5 = arith.constant 0 : index
    %c0_6 = arith.constant 0 : index
    %28 = vector.load %arg2[%c0_5, %c0_6] : memref<8x32xf32, #tpu.memory_space<vmem>>, vector<8x32xf32>
    %29 = tpu.concatenate %28, %28 in 0 : vector<8x32xf32>, vector<8x32xf32> -> vector<16x32xf32>
    %c0_7 = arith.constant 0 : index
    %c0_8 = arith.constant 0 : index
    %30 = vector.load %arg3[%c0_7, %c0_8] : memref<2x32xf32, #tpu.memory_space<vmem>>, vector<1x32xf32>
    %c1 = arith.constant 1 : index
    %c0_9 = arith.constant 0 : index
    %31 = vector.load %arg3[%c1, %c0_9] : memref<2x32xf32, #tpu.memory_space<vmem>>, vector<1x32xf32>
    %32 = arith.addf %27, %29 : vector<16x32xf32>
    %cst_10 = arith.constant dense<0.000000e+00> : vector<16xf32>
    %33 = vector.multi_reduction <add>, %32, %cst_10 [1] : vector<16x32xf32> to vector<16xf32>
    %34 = vector.shape_cast %33 : vector<16xf32> to vector<16x1xf32>
    %cst_11 = arith.constant 3.200000e+01 : f32
    %35 = vector.broadcast %cst_11 : f32 to vector<16x1xf32>
    %36 = arith.divf %34, %35 : vector<16x1xf32>
    %37 = vector.broadcast %36 : vector<16x1xf32> to vector<16x32xf32>
    %38 = arith.subf %32, %37 : vector<16x32xf32>
    %39 = vector.broadcast %36 : vector<16x1xf32> to vector<16x32xf32>
    %40 = arith.subf %32, %39 : vector<16x32xf32>
    %41 = arith.mulf %38, %40 : vector<16x32xf32>
    %cst_12 = arith.constant dense<0.000000e+00> : vector<16xf32>
    %42 = vector.multi_reduction <add>, %41, %cst_12 [1] : vector<16x32xf32> to vector<16xf32>
    %43 = vector.shape_cast %42 : vector<16xf32> to vector<16x1xf32>
    %cst_13 = arith.constant 3.200000e+01 : f32
    %44 = vector.broadcast %cst_13 : f32 to vector<16x1xf32>
    %45 = arith.divf %43, %44 : vector<16x1xf32>
    %46 = vector.broadcast %36 : vector<16x1xf32> to vector<16x32xf32>
    %47 = arith.subf %32, %46 : vector<16x32xf32>
    %cst_14 = arith.constant 9.99999996E-13 : f32
    %48 = vector.broadcast %cst_14 : f32 to vector<16x1xf32>
    %49 = arith.addf %45, %48 : vector<16x1xf32>
    %50 = math.rsqrt %49 : vector<16x1xf32>
    %51 = vector.broadcast %50 : vector<16x1xf32> to vector<16x32xf32>
    %52 = arith.mulf %47, %51 : vector<16x32xf32>
    %53 = vector.broadcast %30 : vector<1x32xf32> to vector<16x32xf32>
    %54 = arith.mulf %52, %53 : vector<16x32xf32>
    %55 = vector.broadcast %31 : vector<1x32xf32> to vector<16x32xf32>
    %56 = arith.addf %54, %55 : vector<16x32xf32>
    %c0_15 = arith.constant 0 : index
    %c0_16 = arith.constant 0 : index
    %c0_17 = arith.constant 0 : index
    %57 = vector.load %arg4[%c0_15, %c0_16, %c0_17] : memref<2x32x96xf32, #tpu.memory_space<vmem>>, vector<1x32x96xf32>
    %58 = vector.shape_cast %57 : vector<1x32x96xf32> to vector<32x96xf32>
    %c0_18 = arith.constant 0 : index
    %c0_19 = arith.constant 0 : index
    %c0_20 = arith.constant 0 : index
    %59 = vector.load %arg5[%c0_18, %c0_19, %c0_20] : memref<2x32x32xf32, #tpu.memory_space<vmem>>, vector<1x32x32xf32>
    %60 = vector.shape_cast %59 : vector<1x32x32xf32> to vector<32x32xf32>
    %c0_21 = arith.constant 0 : index
    %c0_22 = arith.constant 0 : index
    %c0_23 = arith.constant 0 : index
    %61 = vector.load %arg6[%c0_21, %c0_22, %c0_23] : memref<2x32x128xf32, #tpu.memory_space<vmem>>, vector<1x32x128xf32>
    %62 = vector.shape_cast %61 : vector<1x32x128xf32> to vector<32x128xf32>
    %c0_24 = arith.constant 0 : index
    %c0_25 = arith.constant 0 : index
    %c0_26 = arith.constant 0 : index
    %63 = vector.load %arg7[%c0_24, %c0_25, %c0_26] : memref<2x128x32xf32, #tpu.memory_space<vmem>>, vector<1x128x32xf32>
    %64 = vector.shape_cast %63 : vector<1x128x32xf32> to vector<128x32xf32>
    %c0_27 = arith.constant 0 : index
    %c0_28 = arith.constant 0 : index
    %c0_29 = arith.constant 0 : index
    %65 = vector.load %arg8[%c0_27, %c0_28, %c0_29] : memref<2x8x128xf32, #tpu.memory_space<vmem>>, vector<1x8x128xf32>
    %66 = vector.shape_cast %65 : vector<1x8x128xf32> to vector<8x128xf32>
    %67 = vector.extract_strided_slice %66 {offsets = [0, 0], sizes = [1, 96], strides = [1, 1]} : vector<8x128xf32> to vector<1x96xf32>
    %68 = vector.extract_strided_slice %66 {offsets = [1, 0], sizes = [1, 32], strides = [1, 1]} : vector<8x128xf32> to vector<1x32xf32>
    %69 = vector.extract_strided_slice %66 {offsets = [2, 0], sizes = [1, 32], strides = [1, 1]} : vector<8x128xf32> to vector<1x32xf32>
    %70 = vector.extract_strided_slice %66 {offsets = [3, 0], sizes = [1, 32], strides = [1, 1]} : vector<8x128xf32> to vector<1x32xf32>
    %71 = vector.extract_strided_slice %66 {offsets = [4, 0], sizes = [1, 128], strides = [1, 1]} : vector<8x128xf32> to vector<1x128xf32>
    %72 = vector.extract_strided_slice %66 {offsets = [5, 0], sizes = [1, 32], strides = [1, 1]} : vector<8x128xf32> to vector<1x32xf32>
    %73 = vector.extract_strided_slice %66 {offsets = [6, 0], sizes = [1, 32], strides = [1, 1]} : vector<8x128xf32> to vector<1x32xf32>
    %74 = vector.extract_strided_slice %66 {offsets = [7, 0], sizes = [1, 32], strides = [1, 1]} : vector<8x128xf32> to vector<1x32xf32>
    %cst_30 = arith.constant dense<0.000000e+00> : vector<16x96xf32>
    %75 = tpu.matmul %56, %58, %cst_30 {dimension_numbers = #tpu.dot_dimension_numbers<[1], [0], [0], [1], [0, 0, 1, 1], [], []>} : vector<16x32xf32>, vector<32x96xf32>, vector<16x96xf32> -> vector<16x96xf32>
    %76 = vector.broadcast %67 : vector<1x96xf32> to vector<16x96xf32>
    %77 = arith.addf %75, %76 : vector<16x96xf32>
    %78 = vector.extract_strided_slice %77 {offsets = [0, 0], sizes = [16, 32], strides = [1, 1]} : vector<16x96xf32> to vector<16x32xf32>
    %79 = vector.shape_cast %78 : vector<16x32xf32> to vector<2x8x32xf32>
    %80 = vector.extract_strided_slice %77 {offsets = [0, 32], sizes = [16, 32], strides = [1, 1]} : vector<16x96xf32> to vector<16x32xf32>
    %81 = vector.shape_cast %80 : vector<16x32xf32> to vector<2x8x32xf32>
    %82 = vector.extract_strided_slice %77 {offsets = [0, 64], sizes = [16, 32], strides = [1, 1]} : vector<16x96xf32> to vector<16x32xf32>
    %83 = vector.shape_cast %82 : vector<16x32xf32> to vector<2x8x32xf32>
    %84 = vector.extract_strided_slice %79 {offsets = [0, 0, 0], sizes = [2, 8, 16], strides = [1, 1, 1]} : vector<2x8x32xf32> to vector<2x8x16xf32>
    %85 = vector.extract_strided_slice %81 {offsets = [0, 0, 0], sizes = [2, 8, 16], strides = [1, 1, 1]} : vector<2x8x32xf32> to vector<2x8x16xf32>
    %86 = vector.extract_strided_slice %83 {offsets = [0, 0, 0], sizes = [2, 8, 16], strides = [1, 1, 1]} : vector<2x8x32xf32> to vector<2x8x16xf32>
    "tpu.trace_start"() <{level = 10 : i32, message = "bqd,bkd->bqk"}> : () -> ()
    %cst_31 = arith.constant dense<0.000000e+00> : vector<2x8x8xf32>
    %87 = tpu.matmul %84, %85, %cst_31 {dimension_numbers = #tpu.dot_dimension_numbers<[2], [2], [1], [1], [0, 0, 0, 1, 1, 1], [0], [0]>} : vector<2x8x16xf32>, vector<2x8x16xf32>, vector<2x8x8xf32> -> vector<2x8x8xf32>
    "tpu.trace_stop"() : () -> ()
    %cst_32 = arith.constant 2.500000e-01 : f32
    %88 = vector.broadcast %cst_32 : f32 to vector<2x8x8xf32>
    %89 = arith.mulf %87, %88 : vector<2x8x8xf32>
    %90 = arith.addf %89, %18 : vector<2x8x8xf32>
    %cst_33 = arith.constant dense<0xFF800000> : vector<2x8xf32>
    %91 = vector.multi_reduction <maximumf>, %90, %cst_33 [2] : vector<2x8x8xf32> to vector<2x8xf32>
    %92 = vector.shape_cast %91 : vector<2x8xf32> to vector<2x8x1xf32>
    %93 = vector.broadcast %92 : vector<2x8x1xf32> to vector<2x8x8xf32>
    %94 = arith.subf %90, %93 : vector<2x8x8xf32>
    %95 = math.exp %94 : vector<2x8x8xf32>
    %cst_34 = arith.constant dense<0.000000e+00> : vector<2x8xf32>
    %96 = vector.multi_reduction <add>, %95, %cst_34 [2] : vector<2x8x8xf32> to vector<2x8xf32>
    %97 = vector.shape_cast %96 : vector<2x8xf32> to vector<2x8x1xf32>
    %98 = tpu.reciprocal %97 {approx = true} : vector<2x8x1xf32> -> vector<2x8x1xf32>
    %99 = vector.broadcast %98 : vector<2x8x1xf32> to vector<2x8x8xf32>
    %100 = arith.mulf %95, %99 : vector<2x8x8xf32>
    "tpu.trace_start"() <{level = 10 : i32, message = "bqk,bkd->bqd"}> : () -> ()
    %cst_35 = arith.constant dense<0.000000e+00> : vector<2x8x16xf32>
    %101 = tpu.matmul %100, %86, %cst_35 {dimension_numbers = #tpu.dot_dimension_numbers<[2], [1], [1], [2], [0, 0, 0, 1, 1, 2], [0], [0]>} : vector<2x8x8xf32>, vector<2x8x16xf32>, vector<2x8x16xf32> -> vector<2x8x16xf32>
    "tpu.trace_stop"() : () -> ()
    %c0_36 = arith.constant 0 : index
    %c0_37 = arith.constant 0 : index
    %c0_38 = arith.constant 0 : index
    %102 = vector.load %arg10[%c0_36, %c0_37, %c0_38] : memref<2x8x32xf32, #tpu.memory_space<vmem>>, vector<2x8x16xf32>
    tpu.vector_store %arg10[%c0_36, %c0_37, %c0_38], %101 {strides = array<i32>} : memref<2x8x32xf32, #tpu.memory_space<vmem>>, vector<2x8x16xf32>,
    %103 = vector.extract_strided_slice %79 {offsets = [0, 0, 16], sizes = [2, 8, 16], strides = [1, 1, 1]} : vector<2x8x32xf32> to vector<2x8x16xf32>
    %104 = vector.extract_strided_slice %81 {offsets = [0, 0, 16], sizes = [2, 8, 16], strides = [1, 1, 1]} : vector<2x8x32xf32> to vector<2x8x16xf32>
    %105 = vector.extract_strided_slice %83 {offsets = [0, 0, 16], sizes = [2, 8, 16], strides = [1, 1, 1]} : vector<2x8x32xf32> to vector<2x8x16xf32>
    "tpu.trace_start"() <{level = 10 : i32, message = "bqd,bkd->bqk"}> : () -> ()
    %cst_39 = arith.constant dense<0.000000e+00> : vector<2x8x8xf32>
    %106 = tpu.matmul %103, %104, %cst_39 {dimension_numbers = #tpu.dot_dimension_numbers<[2], [2], [1], [1], [0, 0, 0, 1, 1, 1], [0], [0]>} : vector<2x8x16xf32>, vector<2x8x16xf32>, vector<2x8x8xf32> -> vector<2x8x8xf32>
    "tpu.trace_stop"() : () -> ()
    %cst_40 = arith.constant 2.500000e-01 : f32
    %107 = vector.broadcast %cst_40 : f32 to vector<2x8x8xf32>
    %108 = arith.mulf %106, %107 : vector<2x8x8xf32>
    %109 = arith.addf %108, %18 : vector<2x8x8xf32>
    %cst_41 = arith.constant dense<0xFF800000> : vector<2x8xf32>
    %110 = vector.multi_reduction <maximumf>, %109, %cst_41 [2] : vector<2x8x8xf32> to vector<2x8xf32>
    %111 = vector.shape_cast %110 : vector<2x8xf32> to vector<2x8x1xf32>
    %112 = vector.broadcast %111 : vector<2x8x1xf32> to vector<2x8x8xf32>
    %113 = arith.subf %109, %112 : vector<2x8x8xf32>
    %114 = math.exp %113 : vector<2x8x8xf32>
    %cst_42 = arith.constant dense<0.000000e+00> : vector<2x8xf32>
    %115 = vector.multi_reduction <add>, %114, %cst_42 [2] : vector<2x8x8xf32> to vector<2x8xf32>
    %116 = vector.shape_cast %115 : vector<2x8xf32> to vector<2x8x1xf32>
    %117 = tpu.reciprocal %116 {approx = true} : vector<2x8x1xf32> -> vector<2x8x1xf32>
    %118 = vector.broadcast %117 : vector<2x8x1xf32> to vector<2x8x8xf32>
    %119 = arith.mulf %114, %118 : vector<2x8x8xf32>
    "tpu.trace_start"() <{level = 10 : i32, message = "bqk,bkd->bqd"}> : () -> ()
    %cst_43 = arith.constant dense<0.000000e+00> : vector<2x8x16xf32>
    %120 = tpu.matmul %119, %105, %cst_43 {dimension_numbers = #tpu.dot_dimension_numbers<[2], [1], [1], [2], [0, 0, 0, 1, 1, 2], [0], [0]>} : vector<2x8x8xf32>, vector<2x8x16xf32>, vector<2x8x16xf32> -> vector<2x8x16xf32>
    "tpu.trace_stop"() : () -> ()
    %c0_44 = arith.constant 0 : index
    %c0_45 = arith.constant 0 : index
    %c16 = arith.constant 16 : index
    %121 = vector.load %arg10[%c0_44, %c0_45, %c16] : memref<2x8x32xf32, #tpu.memory_space<vmem>>, vector<2x8x16xf32>
    tpu.vector_store %arg10[%c0_44, %c0_45, %c16], %120 {strides = array<i32>} : memref<2x8x32xf32, #tpu.memory_space<vmem>>, vector<2x8x16xf32>,
    %c0_46 = arith.constant 0 : index
    %c0_47 = arith.constant 0 : index
    %c0_48 = arith.constant 0 : index
    %122 = vector.load %arg10[%c0_46, %c0_47, %c0_48] : memref<2x8x32xf32, #tpu.memory_space<vmem>>, vector<2x8x32xf32>
    %123 = vector.shape_cast %122 : vector<2x8x32xf32> to vector<16x32xf32>
    %cst_49 = arith.constant dense<0.000000e+00> : vector<16x32xf32>
    %124 = tpu.matmul %123, %60, %cst_49 {dimension_numbers = #tpu.dot_dimension_numbers<[1], [0], [0], [1], [0, 0, 1, 1], [], []>} : vector<16x32xf32>, vector<32x32xf32>, vector<16x32xf32> -> vector<16x32xf32>
    %125 = vector.broadcast %68 : vector<1x32xf32> to vector<16x32xf32>
    %126 = arith.addf %124, %125 : vector<16x32xf32>
    %127 = arith.addf %126, %56 : vector<16x32xf32>
    %cst_50 = arith.constant dense<0.000000e+00> : vector<16xf32>
    %128 = vector.multi_reduction <add>, %127, %cst_50 [1] : vector<16x32xf32> to vector<16xf32>
    %129 = vector.shape_cast %128 : vector<16xf32> to vector<16x1xf32>
    %cst_51 = arith.constant 3.200000e+01 : f32
    %130 = vector.broadcast %cst_51 : f32 to vector<16x1xf32>
    %131 = arith.divf %129, %130 : vector<16x1xf32>
    %132 = vector.broadcast %131 : vector<16x1xf32> to vector<16x32xf32>
    %133 = arith.subf %127, %132 : vector<16x32xf32>
    %134 = vector.broadcast %131 : vector<16x1xf32> to vector<16x32xf32>
    %135 = arith.subf %127, %134 : vector<16x32xf32>
    %136 = arith.mulf %133, %135 : vector<16x32xf32>
    %cst_52 = arith.constant dense<0.000000e+00> : vector<16xf32>
    %137 = vector.multi_reduction <add>, %136, %cst_52 [1] : vector<16x32xf32> to vector<16xf32>
    %138 = vector.shape_cast %137 : vector<16xf32> to vector<16x1xf32>
    %cst_53 = arith.constant 3.200000e+01 : f32
    %139 = vector.broadcast %cst_53 : f32 to vector<16x1xf32>
    %140 = arith.divf %138, %139 : vector<16x1xf32>
    %141 = vector.broadcast %131 : vector<16x1xf32> to vector<16x32xf32>
    %142 = arith.subf %127, %141 : vector<16x32xf32>
    %cst_54 = arith.constant 9.99999996E-13 : f32
    %143 = vector.broadcast %cst_54 : f32 to vector<16x1xf32>
    %144 = arith.addf %140, %143 : vector<16x1xf32>
    %145 = math.rsqrt %144 : vector<16x1xf32>
    %146 = vector.broadcast %145 : vector<16x1xf32> to vector<16x32xf32>
    %147 = arith.mulf %142, %146 : vector<16x32xf32>
    %148 = vector.broadcast %69 : vector<1x32xf32> to vector<16x32xf32>
    %149 = arith.mulf %147, %148 : vector<16x32xf32>
    %150 = vector.broadcast %70 : vector<1x32xf32> to vector<16x32xf32>
    %151 = arith.addf %149, %150 : vector<16x32xf32>
    %cst_55 = arith.constant dense<0.000000e+00> : vector<16x128xf32>
    %152 = tpu.matmul %151, %62, %cst_55 {dimension_numbers = #tpu.dot_dimension_numbers<[1], [0], [0], [1], [0, 0, 1, 1], [], []>} : vector<16x32xf32>, vector<32x128xf32>, vector<16x128xf32> -> vector<16x128xf32>
    %153 = vector.broadcast %71 : vector<1x128xf32> to vector<16x128xf32>
    %154 = arith.addf %152, %153 : vector<16x128xf32>
    %cst_56 = arith.constant 5.000000e-01 : f32
    %155 = vector.broadcast %cst_56 : f32 to vector<16x128xf32>
    %156 = arith.mulf %155, %154 : vector<16x128xf32>
    %cst_57 = arith.constant 0.707106769 : f32
    %157 = vector.broadcast %cst_57 : f32 to vector<16x128xf32>
    %158 = arith.mulf %154, %157 : vector<16x128xf32>
    %159 = math.erf %158 : vector<16x128xf32>
    %cst_58 = arith.constant 1.000000e+00 : f32
    %160 = vector.broadcast %cst_58 : f32 to vector<16x128xf32>
    %161 = arith.addf %160, %159 : vector<16x128xf32>
    %162 = arith.mulf %156, %161 : vector<16x128xf32>
    %cst_59 = arith.constant dense<0.000000e+00> : vector<16x32xf32>
    %163 = tpu.matmul %162, %64, %cst_59 {dimension_numbers = #tpu.dot_dimension_numbers<[1], [0], [0], [1], [0, 0, 1, 1], [], []>} : vector<16x128xf32>, vector<128x32xf32>, vector<16x32xf32> -> vector<16x32xf32>
    %164 = vector.broadcast %72 : vector<1x32xf32> to vector<16x32xf32>
    %165 = arith.addf %163, %164 : vector<16x32xf32>
    %166 = arith.addf %165, %151 : vector<16x32xf32>
    %cst_60 = arith.constant dense<0.000000e+00> : vector<16xf32>
    %167 = vector.multi_reduction <add>, %166, %cst_60 [1] : vector<16x32xf32> to vector<16xf32>
    %168 = vector.shape_cast %167 : vector<16xf32> to vector<16x1xf32>
    %cst_61 = arith.constant 3.200000e+01 : f32
    %169 = vector.broadcast %cst_61 : f32 to vector<16x1xf32>
    %170 = arith.divf %168, %169 : vector<16x1xf32>
    %171 = vector.broadcast %170 : vector<16x1xf32> to vector<16x32xf32>
    %172 = arith.subf %166, %171 : vector<16x32xf32>
    %173 = vector.broadcast %170 : vector<16x1xf32> to vector<16x32xf32>
    %174 = arith.subf %166, %173 : vector<16x32xf32>
    %175 = arith.mulf %172, %174 : vector<16x32xf32>
    %cst_62 = arith.constant dense<0.000000e+00> : vector<16xf32>
    %176 = vector.multi_reduction <add>, %175, %cst_62 [1] : vector<16x32xf32> to vector<16xf32>
    %177 = vector.shape_cast %176 : vector<16xf32> to vector<16x1xf32>
    %cst_63 = arith.constant 3.200000e+01 : f32
    %178 = vector.broadcast %cst_63 : f32 to vector<16x1xf32>
    %179 = arith.divf %177, %178 : vector<16x1xf32>
    %180 = vector.broadcast %170 : vector<16x1xf32> to vector<16x32xf32>
    %181 = arith.subf %166, %180 : vector<16x32xf32>
    %cst_64 = arith.constant 9.99999996E-13 : f32
    %182 = vector.broadcast %cst_64 : f32 to vector<16x1xf32>
    %183 = arith.addf %179, %182 : vector<16x1xf32>
    %184 = math.rsqrt %183 : vector<16x1xf32>
    %185 = vector.broadcast %184 : vector<16x1xf32> to vector<16x32xf32>
    %186 = arith.mulf %181, %185 : vector<16x32xf32>
    %187 = vector.broadcast %73 : vector<1x32xf32> to vector<16x32xf32>
    %188 = arith.mulf %186, %187 : vector<16x32xf32>
    %189 = vector.broadcast %74 : vector<1x32xf32> to vector<16x32xf32>
    %190 = arith.addf %188, %189 : vector<16x32xf32>
    %c1_65 = arith.constant 1 : index
    %c0_66 = arith.constant 0 : index
    %c0_67 = arith.constant 0 : index
    %191 = vector.load %arg4[%c1_65, %c0_66, %c0_67] : memref<2x32x96xf32, #tpu.memory_space<vmem>>, vector<1x32x96xf32>
    %192 = vector.shape_cast %191 : vector<1x32x96xf32> to vector<32x96xf32>
    %c1_68 = arith.constant 1 : index
    %c0_69 = arith.constant 0 : index
    %c0_70 = arith.constant 0 : index
    %193 = vector.load %arg5[%c1_68, %c0_69, %c0_70] : memref<2x32x32xf32, #tpu.memory_space<vmem>>, vector<1x32x32xf32>
    %194 = vector.shape_cast %193 : vector<1x32x32xf32> to vector<32x32xf32>
    %c1_71 = arith.constant 1 : index
    %c0_72 = arith.constant 0 : index
    %c0_73 = arith.constant 0 : index
    %195 = vector.load %arg6[%c1_71, %c0_72, %c0_73] : memref<2x32x128xf32, #tpu.memory_space<vmem>>, vector<1x32x128xf32>
    %196 = vector.shape_cast %195 : vector<1x32x128xf32> to vector<32x128xf32>
    %c1_74 = arith.constant 1 : index
    %c0_75 = arith.constant 0 : index
    %c0_76 = arith.constant 0 : index
    %197 = vector.load %arg7[%c1_74, %c0_75, %c0_76] : memref<2x128x32xf32, #tpu.memory_space<vmem>>, vector<1x128x32xf32>
    %198 = vector.shape_cast %197 : vector<1x128x32xf32> to vector<128x32xf32>
    %c1_77 = arith.constant 1 : index
    %c0_78 = arith.constant 0 : index
    %c0_79 = arith.constant 0 : index
    %199 = vector.load %arg8[%c1_77, %c0_78, %c0_79] : memref<2x8x128xf32, #tpu.memory_space<vmem>>, vector<1x8x128xf32>
    %200 = vector.shape_cast %199 : vector<1x8x128xf32> to vector<8x128xf32>
    %201 = vector.extract_strided_slice %200 {offsets = [0, 0], sizes = [1, 96], strides = [1, 1]} : vector<8x128xf32> to vector<1x96xf32>
    %202 = vector.extract_strided_slice %200 {offsets = [1, 0], sizes = [1, 32], strides = [1, 1]} : vector<8x128xf32> to vector<1x32xf32>
    %203 = vector.extract_strided_slice %200 {offsets = [2, 0], sizes = [1, 32], strides = [1, 1]} : vector<8x128xf32> to vector<1x32xf32>
    %204 = vector.extract_strided_slice %200 {offsets = [3, 0], sizes = [1, 32], strides = [1, 1]} : vector<8x128xf32> to vector<1x32xf32>
    %205 = vector.extract_strided_slice %200 {offsets = [4, 0], sizes = [1, 128], strides = [1, 1]} : vector<8x128xf32> to vector<1x128xf32>
    %206 = vector.extract_strided_slice %200 {offsets = [5, 0], sizes = [1, 32], strides = [1, 1]} : vector<8x128xf32> to vector<1x32xf32>
    %207 = vector.extract_strided_slice %200 {offsets = [6, 0], sizes = [1, 32], strides = [1, 1]} : vector<8x128xf32> to vector<1x32xf32>
    %208 = vector.extract_strided_slice %200 {offsets = [7, 0], sizes = [1, 32], strides = [1, 1]} : vector<8x128xf32> to vector<1x32xf32>
    %cst_80 = arith.constant dense<0.000000e+00> : vector<16x96xf32>
    %209 = tpu.matmul %190, %192, %cst_80 {dimension_numbers = #tpu.dot_dimension_numbers<[1], [0], [0], [1], [0, 0, 1, 1], [], []>} : vector<16x32xf32>, vector<32x96xf32>, vector<16x96xf32> -> vector<16x96xf32>
    %210 = vector.broadcast %201 : vector<1x96xf32> to vector<16x96xf32>
    %211 = arith.addf %209, %210 : vector<16x96xf32>
    %212 = vector.extract_strided_slice %211 {offsets = [0, 0], sizes = [16, 32], strides = [1, 1]} : vector<16x96xf32> to vector<16x32xf32>
    %213 = vector.shape_cast %212 : vector<16x32xf32> to vector<2x8x32xf32>
    %214 = vector.extract_strided_slice %211 {offsets = [0, 32], sizes = [16, 32], strides = [1, 1]} : vector<16x96xf32> to vector<16x32xf32>
    %215 = vector.shape_cast %214 : vector<16x32xf32> to vector<2x8x32xf32>
    %216 = vector.extract_strided_slice %211 {offsets = [0, 64], sizes = [16, 32], strides = [1, 1]} : vector<16x96xf32> to vector<16x32xf32>
    %217 = vector.shape_cast %216 : vector<16x32xf32> to vector<2x8x32xf32>
    %218 = vector.extract_strided_slice %213 {offsets = [0, 0, 0], sizes = [2, 8, 16], strides = [1, 1, 1]} : vector<2x8x32xf32> to vector<2x8x16xf32>
    %219 = vector.extract_strided_slice %215 {offsets = [0, 0, 0], sizes = [2, 8, 16], strides = [1, 1, 1]} : vector<2x8x32xf32> to vector<2x8x16xf32>
    %220 = vector.extract_strided_slice %217 {offsets = [0, 0, 0], sizes = [2, 8, 16], strides = [1, 1, 1]} : vector<2x8x32xf32> to vector<2x8x16xf32>
    "tpu.trace_start"() <{level = 10 : i32, message = "bqd,bkd->bqk"}> : () -> ()
    %cst_81 = arith.constant dense<0.000000e+00> : vector<2x8x8xf32>
    %221 = tpu.matmul %218, %219, %cst_81 {dimension_numbers = #tpu.dot_dimension_numbers<[2], [2], [1], [1], [0, 0, 0, 1, 1, 1], [0], [0]>} : vector<2x8x16xf32>, vector<2x8x16xf32>, vector<2x8x8xf32> -> vector<2x8x8xf32>
    "tpu.trace_stop"() : () -> ()
    %cst_82 = arith.constant 2.500000e-01 : f32
    %222 = vector.broadcast %cst_82 : f32 to vector<2x8x8xf32>
    %223 = arith.mulf %221, %222 : vector<2x8x8xf32>
    %224 = arith.addf %223, %18 : vector<2x8x8xf32>
    %cst_83 = arith.constant dense<0xFF800000> : vector<2x8xf32>
    %225 = vector.multi_reduction <maximumf>, %224, %cst_83 [2] : vector<2x8x8xf32> to vector<2x8xf32>
    %226 = vector.shape_cast %225 : vector<2x8xf32> to vector<2x8x1xf32>
    %227 = vector.broadcast %226 : vector<2x8x1xf32> to vector<2x8x8xf32>
    %228 = arith.subf %224, %227 : vector<2x8x8xf32>
    %229 = math.exp %228 : vector<2x8x8xf32>
    %cst_84 = arith.constant dense<0.000000e+00> : vector<2x8xf32>
    %230 = vector.multi_reduction <add>, %229, %cst_84 [2] : vector<2x8x8xf32> to vector<2x8xf32>
    %231 = vector.shape_cast %230 : vector<2x8xf32> to vector<2x8x1xf32>
    %232 = tpu.reciprocal %231 {approx = true} : vector<2x8x1xf32> -> vector<2x8x1xf32>
    %233 = vector.broadcast %232 : vector<2x8x1xf32> to vector<2x8x8xf32>
    %234 = arith.mulf %229, %233 : vector<2x8x8xf32>
    "tpu.trace_start"() <{level = 10 : i32, message = "bqk,bkd->bqd"}> : () -> ()
    %cst_85 = arith.constant dense<0.000000e+00> : vector<2x8x16xf32>
    %235 = tpu.matmul %234, %220, %cst_85 {dimension_numbers = #tpu.dot_dimension_numbers<[2], [1], [1], [2], [0, 0, 0, 1, 1, 2], [0], [0]>} : vector<2x8x8xf32>, vector<2x8x16xf32>, vector<2x8x16xf32> -> vector<2x8x16xf32>
    "tpu.trace_stop"() : () -> ()
    %c0_86 = arith.constant 0 : index
    %c0_87 = arith.constant 0 : index
    %c0_88 = arith.constant 0 : index
    %236 = vector.load %arg10[%c0_86, %c0_87, %c0_88] : memref<2x8x32xf32, #tpu.memory_space<vmem>>, vector<2x8x16xf32>
    tpu.vector_store %arg10[%c0_86, %c0_87, %c0_88], %235 {strides = array<i32>} : memref<2x8x32xf32, #tpu.memory_space<vmem>>, vector<2x8x16xf32>,
    %237 = vector.extract_strided_slice %213 {offsets = [0, 0, 16], sizes = [2, 8, 16], strides = [1, 1, 1]} : vector<2x8x32xf32> to vector<2x8x16xf32>
    %238 = vector.extract_strided_slice %215 {offsets = [0, 0, 16], sizes = [2, 8, 16], strides = [1, 1, 1]} : vector<2x8x32xf32> to vector<2x8x16xf32>
    %239 = vector.extract_strided_slice %217 {offsets = [0, 0, 16], sizes = [2, 8, 16], strides = [1, 1, 1]} : vector<2x8x32xf32> to vector<2x8x16xf32>
    "tpu.trace_start"() <{level = 10 : i32, message = "bqd,bkd->bqk"}> : () -> ()
    %cst_89 = arith.constant dense<0.000000e+00> : vector<2x8x8xf32>
    %240 = tpu.matmul %237, %238, %cst_89 {dimension_numbers = #tpu.dot_dimension_numbers<[2], [2], [1], [1], [0, 0, 0, 1, 1, 1], [0], [0]>} : vector<2x8x16xf32>, vector<2x8x16xf32>, vector<2x8x8xf32> -> vector<2x8x8xf32>
    "tpu.trace_stop"() : () -> ()
    %cst_90 = arith.constant 2.500000e-01 : f32
    %241 = vector.broadcast %cst_90 : f32 to vector<2x8x8xf32>
    %242 = arith.mulf %240, %241 : vector<2x8x8xf32>
    %243 = arith.addf %242, %18 : vector<2x8x8xf32>
    %cst_91 = arith.constant dense<0xFF800000> : vector<2x8xf32>
    %244 = vector.multi_reduction <maximumf>, %243, %cst_91 [2] : vector<2x8x8xf32> to vector<2x8xf32>
    %245 = vector.shape_cast %244 : vector<2x8xf32> to vector<2x8x1xf32>
    %246 = vector.broadcast %245 : vector<2x8x1xf32> to vector<2x8x8xf32>
    %247 = arith.subf %243, %246 : vector<2x8x8xf32>
    %248 = math.exp %247 : vector<2x8x8xf32>
    %cst_92 = arith.constant dense<0.000000e+00> : vector<2x8xf32>
    %249 = vector.multi_reduction <add>, %248, %cst_92 [2] : vector<2x8x8xf32> to vector<2x8xf32>
    %250 = vector.shape_cast %249 : vector<2x8xf32> to vector<2x8x1xf32>
    %251 = tpu.reciprocal %250 {approx = true} : vector<2x8x1xf32> -> vector<2x8x1xf32>
    %252 = vector.broadcast %251 : vector<2x8x1xf32> to vector<2x8x8xf32>
    %253 = arith.mulf %248, %252 : vector<2x8x8xf32>
    "tpu.trace_start"() <{level = 10 : i32, message = "bqk,bkd->bqd"}> : () -> ()
    %cst_93 = arith.constant dense<0.000000e+00> : vector<2x8x16xf32>
    %254 = tpu.matmul %253, %239, %cst_93 {dimension_numbers = #tpu.dot_dimension_numbers<[2], [1], [1], [2], [0, 0, 0, 1, 1, 2], [0], [0]>} : vector<2x8x8xf32>, vector<2x8x16xf32>, vector<2x8x16xf32> -> vector<2x8x16xf32>
    "tpu.trace_stop"() : () -> ()
    %c0_94 = arith.constant 0 : index
    %c0_95 = arith.constant 0 : index
    %c16_96 = arith.constant 16 : index
    %255 = vector.load %arg10[%c0_94, %c0_95, %c16_96] : memref<2x8x32xf32, #tpu.memory_space<vmem>>, vector<2x8x16xf32>
    tpu.vector_store %arg10[%c0_94, %c0_95, %c16_96], %254 {strides = array<i32>} : memref<2x8x32xf32, #tpu.memory_space<vmem>>, vector<2x8x16xf32>,
    %c0_97 = arith.constant 0 : index
    %c0_98 = arith.constant 0 : index
    %c0_99 = arith.constant 0 : index
    %256 = vector.load %arg10[%c0_97, %c0_98, %c0_99] : memref<2x8x32xf32, #tpu.memory_space<vmem>>, vector<2x8x32xf32>
    %257 = vector.shape_cast %256 : vector<2x8x32xf32> to vector<16x32xf32>
    %cst_100 = arith.constant dense<0.000000e+00> : vector<16x32xf32>
    %258 = tpu.matmul %257, %194, %cst_100 {dimension_numbers = #tpu.dot_dimension_numbers<[1], [0], [0], [1], [0, 0, 1, 1], [], []>} : vector<16x32xf32>, vector<32x32xf32>, vector<16x32xf32> -> vector<16x32xf32>
    %259 = vector.broadcast %202 : vector<1x32xf32> to vector<16x32xf32>
    %260 = arith.addf %258, %259 : vector<16x32xf32>
    %261 = arith.addf %260, %190 : vector<16x32xf32>
    %cst_101 = arith.constant dense<0.000000e+00> : vector<16xf32>
    %262 = vector.multi_reduction <add>, %261, %cst_101 [1] : vector<16x32xf32> to vector<16xf32>
    %263 = vector.shape_cast %262 : vector<16xf32> to vector<16x1xf32>
    %cst_102 = arith.constant 3.200000e+01 : f32
    %264 = vector.broadcast %cst_102 : f32 to vector<16x1xf32>
    %265 = arith.divf %263, %264 : vector<16x1xf32>
    %266 = vector.broadcast %265 : vector<16x1xf32> to vector<16x32xf32>
    %267 = arith.subf %261, %266 : vector<16x32xf32>
    %268 = vector.broadcast %265 : vector<16x1xf32> to vector<16x32xf32>
    %269 = arith.subf %261, %268 : vector<16x32xf32>
    %270 = arith.mulf %267, %269 : vector<16x32xf32>
    %cst_103 = arith.constant dense<0.000000e+00> : vector<16xf32>
    %271 = vector.multi_reduction <add>, %270, %cst_103 [1] : vector<16x32xf32> to vector<16xf32>
    %272 = vector.shape_cast %271 : vector<16xf32> to vector<16x1xf32>
    %cst_104 = arith.constant 3.200000e+01 : f32
    %273 = vector.broadcast %cst_104 : f32 to vector<16x1xf32>
    %274 = arith.divf %272, %273 : vector<16x1xf32>
    %275 = vector.broadcast %265 : vector<16x1xf32> to vector<16x32xf32>
    %276 = arith.subf %261, %275 : vector<16x32xf32>
    %cst_105 = arith.constant 9.99999996E-13 : f32
    %277 = vector.broadcast %cst_105 : f32 to vector<16x1xf32>
    %278 = arith.addf %274, %277 : vector<16x1xf32>
    %279 = math.rsqrt %278 : vector<16x1xf32>
    %280 = vector.broadcast %279 : vector<16x1xf32> to vector<16x32xf32>
    %281 = arith.mulf %276, %280 : vector<16x32xf32>
    %282 = vector.broadcast %203 : vector<1x32xf32> to vector<16x32xf32>
    %283 = arith.mulf %281, %282 : vector<16x32xf32>
    %284 = vector.broadcast %204 : vector<1x32xf32> to vector<16x32xf32>
    %285 = arith.addf %283, %284 : vector<16x32xf32>
    %cst_106 = arith.constant dense<0.000000e+00> : vector<16x128xf32>
    %286 = tpu.matmul %285, %196, %cst_106 {dimension_numbers = #tpu.dot_dimension_numbers<[1], [0], [0], [1], [0, 0, 1, 1], [], []>} : vector<16x32xf32>, vector<32x128xf32>, vector<16x128xf32> -> vector<16x128xf32>
    %287 = vector.broadcast %205 : vector<1x128xf32> to vector<16x128xf32>
    %288 = arith.addf %286, %287 : vector<16x128xf32>
    %cst_107 = arith.constant 5.000000e-01 : f32
    %289 = vector.broadcast %cst_107 : f32 to vector<16x128xf32>
    %290 = arith.mulf %289, %288 : vector<16x128xf32>
    %cst_108 = arith.constant 0.707106769 : f32
    %291 = vector.broadcast %cst_108 : f32 to vector<16x128xf32>
    %292 = arith.mulf %288, %291 : vector<16x128xf32>
    %293 = math.erf %292 : vector<16x128xf32>
    %cst_109 = arith.constant 1.000000e+00 : f32
    %294 = vector.broadcast %cst_109 : f32 to vector<16x128xf32>
    %295 = arith.addf %294, %293 : vector<16x128xf32>
    %296 = arith.mulf %290, %295 : vector<16x128xf32>
    %cst_110 = arith.constant dense<0.000000e+00> : vector<16x32xf32>
    %297 = tpu.matmul %296, %198, %cst_110 {dimension_numbers = #tpu.dot_dimension_numbers<[1], [0], [0], [1], [0, 0, 1, 1], [], []>} : vector<16x128xf32>, vector<128x32xf32>, vector<16x32xf32> -> vector<16x32xf32>
    %298 = vector.broadcast %206 : vector<1x32xf32> to vector<16x32xf32>
    %299 = arith.addf %297, %298 : vector<16x32xf32>
    %300 = arith.addf %299, %285 : vector<16x32xf32>
    %cst_111 = arith.constant dense<0.000000e+00> : vector<16xf32>
    %301 = vector.multi_reduction <add>, %300, %cst_111 [1] : vector<16x32xf32> to vector<16xf32>
    %302 = vector.shape_cast %301 : vector<16xf32> to vector<16x1xf32>
    %cst_112 = arith.constant 3.200000e+01 : f32
    %303 = vector.broadcast %cst_112 : f32 to vector<16x1xf32>
    %304 = arith.divf %302, %303 : vector<16x1xf32>
    %305 = vector.broadcast %304 : vector<16x1xf32> to vector<16x32xf32>
    %306 = arith.subf %300, %305 : vector<16x32xf32>
    %307 = vector.broadcast %304 : vector<16x1xf32> to vector<16x32xf32>
    %308 = arith.subf %300, %307 : vector<16x32xf32>
    %309 = arith.mulf %306, %308 : vector<16x32xf32>
    %cst_113 = arith.constant dense<0.000000e+00> : vector<16xf32>
    %310 = vector.multi_reduction <add>, %309, %cst_113 [1] : vector<16x32xf32> to vector<16xf32>
    %311 = vector.shape_cast %310 : vector<16xf32> to vector<16x1xf32>
    %cst_114 = arith.constant 3.200000e+01 : f32
    %312 = vector.broadcast %cst_114 : f32 to vector<16x1xf32>
    %313 = arith.divf %311, %312 : vector<16x1xf32>
    %314 = vector.broadcast %304 : vector<16x1xf32> to vector<16x32xf32>
    %315 = arith.subf %300, %314 : vector<16x32xf32>
    %cst_115 = arith.constant 9.99999996E-13 : f32
    %316 = vector.broadcast %cst_115 : f32 to vector<16x1xf32>
    %317 = arith.addf %313, %316 : vector<16x1xf32>
    %318 = math.rsqrt %317 : vector<16x1xf32>
    %319 = vector.broadcast %318 : vector<16x1xf32> to vector<16x32xf32>
    %320 = arith.mulf %315, %319 : vector<16x32xf32>
    %321 = vector.broadcast %207 : vector<1x32xf32> to vector<16x32xf32>
    %322 = arith.mulf %320, %321 : vector<16x32xf32>
    %323 = vector.broadcast %208 : vector<1x32xf32> to vector<16x32xf32>
    %324 = arith.addf %322, %323 : vector<16x32xf32>
    %c0_116 = arith.constant 0 : index
    %c0_117 = arith.constant 0 : index
    %325 = vector.load %arg9[%c0_116, %c0_117] : memref<16x32xf32, #tpu.memory_space<vmem>>, vector<16x32xf32>
    tpu.vector_store %arg9[%c0_116, %c0_117], %324 {strides = array<i32>} : memref<16x32xf32, #tpu.memory_space<vmem>>, vector<16x32xf32>,
    return
  }
}

</mosaic_0001>

<bundles_post_ra>
// kernel: tpu_custom_call.1
= control target key start
LH: loop header
LB: loop body
LE: loop exit
PB: predicated region body
PF: predicated region fallthrough
CT: control target
= control target key end

     0   :  { %v37_v0 = vlaneseq  ;;  %v3174_v5 = vmov 0.0   ;;  %s3754_s0 = inlined_call_operand.vmem [shape: s32[2,8], index: 0, kind: input, shape index: {}]   ;;  %s3755_s1 = inlined_call_operand.vmem [shape: f32[64,32], index: 1, kind: input, shape index: {}]   ;;  %s3756_s2 = inlined_call_operand.vmem [shape: f32[8,32], index: 2, kind: input, shape index: {}]   ;;  %s3757_s3 = inlined_call_operand.vmem [shape: f32[2,32], index: 3, kind: input, shape index: {}]   ;;  %s3758_s4 = inlined_call_operand.vmem [shape: f32[2,32,96], index: 4, kind: input, shape index: {}]   ;;  %s3759_s5 = inlined_call_operand.vmem [shape: f32[2,32,32], index: 5, kind: input, shape index: {}]   ;;  %s3760_s6 = inlined_call_operand.vmem [shape: f32[2,32,128], index: 6, kind: input, shape index: {}]   ;;  %s3761_s7 = inlined_call_operand.vmem [shape: f32[2,128,32], index: 7, kind: input, shape index: {}]   ;;  %s3762_s8 = inlined_call_operand.vmem [shape: f32[2,8,128], index: 8, kind: input, shape index: {}]   ;;  %s3763_s9 = inlined_call_operand.hbm [shape: f32[16,32], index: 9, kind: output, shape index: {}]  }
   0x1   :  { %v103_v1 = vld [vmem:[%s3755_s1] sm:$0xff]  ;;  %v104_v2 = vld [vmem:[%s3755_s1 + $0x8] sm:$0xff]  ;;  %v105_v3 = vld [vmem:[%s3755_s1 + $0x10] sm:$0xff]  ;;  %2755 = vmatprep.subr.mxu0 %v3174_v5 }
   0x2   :  { %v106_v4 = vld [vmem:[%s3755_s1 + $0x18] sm:$0xff]  ;;  %v3252_v6 = vld [vmem:[%s3754_s0] sm:$0x3]  ;;  %v3254_v7 = vshrl.u32 %v37_v0, 7  ;;  %v2950_v8 = vpack.c.bf16 %v104_v2, %v103_v1  ;;  %v108_v11 = vld [vmem:[%s3755_s1 + $0x28] sm:$0xff] }
   0x3   :  { %v2954_v9 = vpack.c.bf16 %v106_v4, %v105_v3  ;;  %v107_v10 = vld [vmem:[%s3755_s1 + $0x20] sm:$0xff] }
   0x4   :  { %14 = vsyncpa [#allocation4], 0  ;;  %v3263_v12 = vsub.s32 0, %v3254_v7  ;;  %v3266_v13 = vsub.s32 1, %v3254_v7  ;;  %2951 = vmatprep.subr.bf16.mxu1 %v2950_v8  ;;  %v2958_v15 = vpack.c.bf16 %v108_v11, %v107_v10  ;;  %v109_v16 = vld [vmem:[%s3755_s1 + $0x30] sm:$0xff]  ;;  %v110_v17 = vld [vmem:[%s3755_s1 + $0x38] sm:$0xff] }
   0x5   :  { %2953 = vmatpush3.bf16.msra.mxu1 %v2950_v8  ;;  %v2962_v19 = vpack.c.bf16 %v110_v17, %v109_v16  ;;  %v3278_v20 = vand.u32 127, %v37_v0  ;;  %vm114_vm0 = vcmask 523264   ;;  %v111_v25 = vld [vmem:[%s3756_s2] sm:$0xff]  ;;  %vm196_vm3 = vcmask 261120   ;;  %v237_v43 = vld [vmem:[%s3758_s4 + $0x8] sm:$0xff]  ;;  %v238_v45 = vld [vmem:[%s3758_s4 + $0x10] sm:$0xff] }
   0x6   :  { %v86_v14 = vrot.slane %v3252_v6, %v3263_v12  ;;  %2955 = vmatprep.subr.bf16.mxu1 %v2954_v9  ;;  %v93_v18 = vrot.slane %v3252_v6, %v3266_v13  ;;  %v236_v42 = vld [vmem:[%s3758_s4] sm:$0xff]  ;;  %v239_v46 = vld [vmem:[%s3758_s4 + $0x18] sm:$0xff]  ;;  %vm3175_vm4 = vmmov 0   ;;  %s3176_s18 = smov 96   ;;  %vm353_vm5 = vcmask 130048   ;;  %s3178_s19 = smov 64  }
   0x7   :  { %v2966_v44 = vpack.c.bf16 %v237_v43, %v236_v42  ;;  %v2970_v47 = vpack.c.bf16 %v239_v46, %v238_v45  ;;  %v2534_v55 = vld [vmem:[%s3757_s3] ss:$0 sm:$0xff]  ;;  %v2535_v57 = vld [vmem:[%s3757_s3 + $0x1] ss:$0 sm:$0xff]  ;;  %2757 = vmatprep.mubr.msk.f32.mxu0 %vm3175_vm4, %v3174_v5  ;;  %v3177_v11 = vmov 1966171168   ;;  %vm41_vm7 = vcmp.ge.s32.totalorder %v3254_v7, %v3278_v20 }
   0x8   :  { %88 = vbcast.lane.b32.xlu0 %v86_v14, 256  ;;  %v3325_v0 = vld [vmem:[%s3762_s8] sm:$0xff]  ;;  %v46_v14 = vunpack.c.l.s4 %v3177_v11  ;;  %vm34_vm6 = vcmp.gt.s32.totalorder %v3252_v6, 0  ;;  %vm509_vm8 = vcmask 64512   ;;  %s3179_s20 = smov 80   ;;  %s3180_s21 = smov 112  }
   0x9   :  { %2957 = vmatpush3.bf16.msra.mxu1 %v2954_v9  ;;  %v268_v1 = vrot.slane %v3325_v0, %v3263_v12  ;;  %v2528_v17 = vsel %vm34_vm6, 1.0, %v3174_v5  ;;  %s3181_s22 = smov 48   ;;  %s3182_s28 = smov 16   ;;  %vm1028_vm9 = vcmask 261248  }
   0xa   :  { %2959 = vmatprep.subr.bf16.mxu1 %v2958_v15 }
   0xc   :  { %95 = vbcast.lane.b32.xlu0 %v93_v18, 256 }
   0xd   :  { %2961 = vmatpush3.bf16.msra.mxu1 %v2958_v15  ;;  %v47_v15 = vunpack.c.0.s8 %v46_v14 }
   0xe   :  { %2963 = vmatprep.subr.bf16.mxu1 %v2962_v19 }
   0xf   :  { %v50_v16 = vsub.s32 %v47_v15, %v3254_v7 }
  0x11   :  { %2965 = vmatpush3.bf16.msra.mxu1 %v2962_v19  ;;  %v51_v18 = vrot.slane %v2528_v17, %v50_v16 }
  0x12   :  { %2967 = vmatprep.subr.bf16.mxu1 %v2966_v44 }
  0x13   :  { %v52_v19 = vcombine.high %v51_v18, %v51_v18 }
  0x7a   :  { %v89_v21 = vpop.permute.xlu0 %88 }
  0x7b   :  { %vm97_vm1 = vcmp.eq.s32.totalorder %v3278_v20, %v89_v21  ;;  %v59_v21 = vrot.slane %v51_v18, %v50_v16 }
  0x7c   :  { %v2530_v22 = vsel %vm97_vm1, 1.0, %v3174_v5 }
  0x7d   :  { %2731 = vmatprep.mubr.msk.f32.mxu1 %vm114_vm0, %v2530_v22  ;;  %v66_v22 = vrot.slane %v52_v19, %v50_v16 }
  0x7e   :  { %v96_v23 = vpop.permute.xlu0 %95 }
  0x7f   :  { %vm98_vm2 = vcmp.eq.s32.totalorder %v3278_v20, %v96_v23  ;;  %v70_v23 = vrot.slane %v59_v21, %v3263_v12 }
  0x80   :  { %v2531_v24 = vsel %vm98_vm2, 1.0, %v3174_v5 }
  0x81   :  { %2732 = vmatmul.mubr.msk.f32.vlgmr.msra.gmra.mrb[0].mxu1 %vm114_vm0, %v2531_v24  ;;  %v2529_v24 = vsel %vm41_vm7, 1.0, %v3174_v5 }
  0x82   :  { %2969 = vmatpush3.bf16.msra.mxu1 %v2966_v44 }
  0x83   :  { %2971 = vmatprep.subr.bf16.mxu1 %v2970_v47 }
  0x86   :  { %2973 = vmatpush3.bf16.msra.mxu1 %v2970_v47 }
  0x87   :  { %2745 = vmatprep.subr.mxu1 %v3174_v5 }
 0x154   :  { %v2733_v26 = vpop.f32.mrb[0].mxu1 }
 0x155   :  { %v187_v27 = vpop.f32.mrb[1].mxu1  ;;  %v193_v29 = vadd.f32 %v2733_v26, %v111_v25  ;;  %v77_v26 = vmul.f32 %v2529_v24, %v70_v23 }
 0x156   :  { %v188_v28 = vadd.f32 %v187_v27, %v111_v25  ;;  %v74_v25 = vrot.slane %v66_v22, %v3263_v12 }
 0x157   :  { %v200_v31 = vsel %vm196_vm3, %v193_v29, 0.0  ;;  %v79_v27 = vsub.f32 1.0, %v77_v26 }
 0x158   :  { %v197_v30 = vsel %vm196_vm3, %v188_v28, 0.0  ;;  %v78_v6 = vmul.f32 %v2529_v24, %v74_v25 }
 0x159   :  { %198 = vadd.xlane.f32.xlu1 %v197_v30 }
 0x15d   :  { %201 = vadd.xlane.f32.xlu1 %v200_v31 }
 0x1e6   :  { %v199_v32 = vpop.xlane.xlu1 %198 }
 0x1e7   :  { %v204_v33 = vmul.f32 0.03125, %v199_v32 }
 0x1e9   :  { %v206_v34 = vsub.f32 %v188_v28, %v204_v33  ;;  %v3357_v28 = vmul.f32 -10000.0, %v79_v27 }
 0x1ea   :  { %v202_v35 = vpop.xlane.xlu1 %201 }
 0x1eb   :  { %v205_v36 = vmul.f32 0.03125, %v202_v35  ;;  %v208_v37 = vmul.f32 %v206_v34, %v206_v34 }
 0x1ed   :  { %v207_v38 = vsub.f32 %v193_v29, %v205_v36  ;;  %v210_v39 = vsel %vm196_vm3, %v208_v37, 0.0  ;;  %v80_v29 = vsub.f32 1.0, %v78_v6 }
 0x1ee   :  { %211 = vadd.xlane.f32.xlu0 %v210_v39 }
 0x1ef   :  { %v209_v40 = vmul.f32 %v207_v38, %v207_v38  ;;  %v3360_v20 = vmul.f32 -10000.0, %v80_v29 }
 0x1f1   :  { %v213_v41 = vsel %vm196_vm3, %v209_v40, 0.0 }
 0x1f2   :  { %214 = vadd.xlane.f32.xlu1 %v213_v41 }
 0x27b   :  { %v212_v48 = vpop.xlane.xlu0 %211 }
 0x27c   :  { %v216_v49 = vmul.f32 0.03125, %v212_v48 }
 0x27e   :  { %v218_v50 = vadd.f32 1e-12, %v216_v49 }
 0x27f   :  { %v215_v51 = vpop.xlane.xlu1 %214 }
 0x280   :  { %3090 = vrsqrt.f32 %v218_v50  ;;  %v217_v52 = vmul.f32 0.03125, %v215_v51 }
 0x282   :  { %v219_v53 = vadd.f32 1e-12, %v217_v52 }
 0x284   :  { %3092 = vrsqrt.f32 %v219_v53 }
 0x28a   :  { %v3091_v54 = vpop.eup %3090 }
 0x28b   :  { %v222_v56 = vmul.f32 %v3091_v54, %v206_v34 }
 0x28d   :  { %v228_v58 = vmul.f32 %v2534_v55, %v222_v56 }
 0x28e   :  { %v3093_v59 = vpop.eup %3092 }
 0x28f   :  { %v223_v60 = vmul.f32 %v3093_v59, %v207_v38  ;;  %v3310_v61 = vadd.f32 %v2535_v57, %v228_v58 }
 0x291   :  { %v229_v62 = vmul.f32 %v2534_v55, %v223_v60  ;;  %2742 = vmatprep.mubr.msk.f32.mxu1 %vm196_vm3, %v3310_v61 }
 0x293   :  { %v3314_v63 = vadd.f32 %v2535_v57, %v229_v62 }
 0x295   :  { %2743 = vmatmul.mubr.msk.f32.vlgmr.msra.gmra.mrb[2].mxu1 %vm196_vm3, %v3314_v63 }
 0x296   :  { %2747 = vmatprep.mubr.msk.f32.mxu1 %vm3175_vm4, %v3174_v5 }
 0x368   :  { %v2744_v2 = vpop.f32.mrb[2].mxu1 }
 0x369   :  { %v341_v3 = vpop.f32.mrb[3].mxu1  ;;  %v3333_v8 = vadd.f32 %v2744_v2, %v268_v1 }
 0x36a   :  { %v3329_v4 = vadd.f32 %v341_v3, %v268_v1 }
 0x36c   :  { %351 = vrot.lane.b32.xlu1 %v3329_v4, %s3176_s18 }
 0x370   :  { %429 = vrot.lane.b32.xlu1 %v3333_v8, %s3176_s18 }
 0x3de   :  { %v352_v9 = vpop.permute.xlu1 %351 }
 0x3df   :  { %2746 = vmatpush3.xpose.msk.msra.mxu1 %vm353_vm5, %v352_v9 }
 0x3e0   :  { %2750 = vmatprep.subr.mxu1 %v3174_v5 }
 0x3e2   :  { %2748 = vmatmul.mubr.msk.f32.vlgmr.msra.gmra.mrb[4].mxu1 %vm353_vm5, %v3329_v4  ;;  %v430_v10 = vpop.permute.xlu1 %429 }
 0x3e3   :  { %2751 = vmatpush3.xpose.msk.msra.mxu1 %vm353_vm5, %v430_v10  ;;  %2752 = vmatprep.mubr.msk.f32.mxu1 %vm3175_vm4, %v3174_v5 }
 0x3e4   :  { %2760 = vmatprep.subr.mxu1 %v3174_v5 }
 0x3e6   :  { %2753 = vmatmul.mubr.msk.f32.vlgmr.msra.gmra.mrb[6].mxu1 %vm353_vm5, %v3333_v8 }
 0x3e7   :  { %2762 = vmatprep.mubr.msk.f32.mxu1 %vm3175_vm4, %v3174_v5 }
 0x4b5   :  { %v424_v30 = vpop.f32.mrb[4].mxu1 }
 0x4b6   :  { %v505_v31 = vmul.f32 0.25, %v424_v30  ;;  %v2749_v32 = vpop.f32.mrb[5].mxu1 }
 0x4b8   :  { %v507_v33 = vadd.f32 %v505_v31, %v3357_v28 }
 0x4b9   :  { %v501_v34 = vpop.f32.mrb[6].mxu1 }
 0x4ba   :  { %v506_v35 = vmul.f32 0.25, %v501_v34  ;;  %v2754_v36 = vpop.f32.mrb[7].mxu1  ;;  %v510_v37 = vsel %vm509_vm8, %v507_v33, -inf }
 0x4bb   :  { %511 = vmax.xlane.f32.xlu1 %v510_v37 }
 0x4bc   :  { %v508_v38 = vadd.f32 %v506_v35, %v3360_v20 }
 0x4be   :  { %v513_v39 = vsel %vm509_vm8, %v508_v38, -inf }
 0x4bf   :  { %514 = vmax.xlane.f32.xlu0 %v513_v39 }
 0x4cc   :  { %608 = vrot.lane.b32.xlu1 %v3333_v8, %s3178_s19 }
 0x4d5   :  { %532 = vrot.lane.b32.xlu0 %v3329_v4, %s3178_s19 }
 0x4d9   :  { %688 = vrot.lane.b32.xlu0 %v3329_v4, %s3179_s20 }
 0x4dd   :  { %766 = vrot.lane.b32.xlu0 %v3333_v8, %s3179_s20 }
 0x4e1   :  { %686 = vrot.lane.b32.xlu0 %v3329_v4, %s3180_s21 }
 0x548   :  { %v512_v40 = vpop.xlane.xlu1 %511 }
 0x549   :  { %v516_v41 = vsub.f32 %v507_v33, %v512_v40 }
 0x54b   :  { %v518_v42 = vmul.f32 1.442695, %v516_v41 }
 0x54c   :  { %v609_v43 = vpop.permute.xlu1 %608  ;;  %v515_v44 = vpop.xlane.xlu0 %514 }
 0x54d   :  { %3094 = vpow2.f32 %v518_v42  ;;  %v517_v45 = vsub.f32 %v508_v38, %v515_v44  ;;  %2761 = vmatpush3.msra.mxu1 %v609_v43  ;;  %v242_v42 = vld [vmem:[%s3759_s5 + $0x10] sm:$0xff]  ;;  %v243_v43 = vld [vmem:[%s3759_s5 + $0x18] sm:$0xff] }
 0x54e   :  { %2770 = vmatprep.subr.mxu1 %v3174_v5  ;;  %v2978_v44 = vpack.c.bf16 %v243_v43, %v242_v42 }
 0x54f   :  { %v520_v46 = vmul.f32 1.442695, %v517_v45 }
 0x550   :  { %v533_v47 = vpop.permute.xlu0 %532 }
 0x551   :  { %3096 = vpow2.f32 %v520_v46  ;;  %2756 = vmatpush3.msra.mxu0 %v533_v47 }
 0x552   :  { %2765 = vmatprep.subr.mxu0 %v3174_v5 }
 0x554   :  { %v689_v52 = vpop.permute.xlu0 %688 }
 0x557   :  { %v3095_v48 = vpop.eup %3094 }
 0x558   :  { %v522_v49 = vsel %vm509_vm8, %v3095_v48, 0.0  ;;  %v767_v53 = vpop.permute.xlu0 %766 }
 0x559   :  { %523 = vadd.xlane.f32.xlu0 %v522_v49 }
 0x55b   :  { %v3097_v50 = vpop.eup %3096 }
 0x55c   :  { %v525_v51 = vsel %vm509_vm8, %v3097_v50, 0.0  ;;  %v687_v54 = vpop.permute.xlu0 %686 }
 0x55d   :  { %526 = vadd.xlane.f32.xlu0 %v525_v51 }
 0x573   :  { %764 = vrot.lane.b32.xlu0 %v3333_v8, %s3180_s21 }
 0x5e6   :  { %v524_v55 = vpop.xlane.xlu0 %523 }
 0x5e7   :  { %3098 = vrcp.f32 %v524_v55 }
 0x5ea   :  { %v527_v56 = vpop.xlane.xlu0 %526 }
 0x5eb   :  { %3100 = vrcp.f32 %v527_v56 }
 0x5ee   :  { %v765_v62 = vpop.permute.xlu0 %764 }
 0x5f1   :  { %v3099_v57 = vpop.eup %3098 }
 0x5f2   :  { %v530_v58 = vmul.f32 %v3099_v57, %v3095_v48 }
 0x5f4   :  { %2758 = vmatmul.mubr.msk.f32.vlgmr.msra.gmra.mrb[0].mxu0 %vm509_vm8, %v530_v58 }
 0x5f5   :  { %v3101_v59 = vpop.eup %3100  ;;  %2766 = vmatpush3.xpose.msk.msra.mxu0 %vm353_vm5, %v689_v52  ;;  %2767 = vmatprep.mubr.msk.f32.mxu0 %vm3175_vm4, %v3174_v5 }
 0x5f6   :  { %v531_v60 = vmul.f32 %v3101_v59, %v3097_v50  ;;  %2775 = vmatprep.subr.mxu0 %v3174_v5 }
 0x5f8   :  { %2763 = vmatmul.mubr.msk.f32.vlgmr.msra.gmra.mrb[8].mxu1 %vm509_vm8, %v531_v60  ;;  %2768 = vmatmul.mubr.msk.f32.vlgmr.msra.gmra.mrb[2].mxu0 %vm353_vm5, %v687_v54 }
 0x5f9   :  { %2771 = vmatpush3.xpose.msk.msra.mxu1 %vm353_vm5, %v767_v53  ;;  %2772 = vmatprep.mubr.msk.f32.mxu1 %vm3175_vm4, %v3174_v5  ;;  %v1036_v53 = vrot.slane %v3325_v0, %v3266_v13 }
 0x5fa   :  { %2780 = vmatprep.subr.mxu1 %v3174_v5  ;;  %2777 = vmatprep.mubr.msk.f32.mxu0 %vm3175_vm4, %v3174_v5 }
 0x5fc   :  { %2773 = vmatmul.mubr.msk.f32.vlgmr.msra.gmra.mrb[10].mxu1 %vm353_vm5, %v765_v62 }
 0x5fd   :  { %2782 = vmatprep.mubr.msk.f32.mxu1 %vm3175_vm4, %v3174_v5 }
 0x6c7   :  { %v604_v1 = vpop.f32.mrb[0].mxu0 }
 0x6c8   :  { %684 = vst.msk [vmem:[#allocation2] sm:$0xff] %vm353_vm5, %v604_v1  ;;  %v2759_v2 = vpop.f32.mrb[1].mxu0 }
 0x6cb   :  { %v680_v3 = vpop.f32.mrb[8].mxu1  ;;  %v760_v9 = vpop.f32.mrb[2].mxu0 }
 0x6cc   :  { %685 = vst.msk [vmem:[#allocation2 + $0x8] sm:$0xff] %vm353_vm5, %v680_v3  ;;  %v842_v10 = vmul.f32 0.25, %v760_v9  ;;  %v2764_v11 = vpop.f32.mrb[9].mxu1  ;;  %v2769_v14 = vpop.f32.mrb[3].mxu0 }
 0x6ce   :  { %v844_v15 = vadd.f32 %v842_v10, %v3357_v28 }
 0x6cf   :  { %v838_v16 = vpop.f32.mrb[10].mxu1 }
 0x6d0   :  { %v843_v17 = vmul.f32 0.25, %v838_v16  ;;  %v2774_v18 = vpop.f32.mrb[11].mxu1  ;;  %v846_v19 = vsel %vm509_vm8, %v844_v15, -inf }
 0x6d1   :  { %847 = vmax.xlane.f32.xlu1 %v846_v19  ;;  %v246_v19 = vld [vmem:[%s3760_s6 + $0x10] sm:$0xff] }
 0x6d2   :  { %v845_v21 = vadd.f32 %v843_v17, %v3360_v20  ;;  %v245_v17 = vld [vmem:[%s3760_s6 + $0x8] sm:$0xff] }
 0x6d4   :  { %v849_v22 = vsel %vm509_vm8, %v845_v21, -inf }
 0x6d5   :  { %850 = vmax.xlane.f32.xlu0 %v849_v22 }
 0x75e   :  { %v848_v23 = vpop.xlane.xlu1 %847 }
 0x75f   :  { %v852_v24 = vsub.f32 %v844_v15, %v848_v23  ;;  %v248_v23 = vld [vmem:[%s3761_s7] sm:$0xff] }
 0x761   :  { %v854_v25 = vmul.f32 1.442695, %v852_v24  ;;  %v249_v24 = vld [vmem:[%s3761_s7 + $0x8] sm:$0xff] }
 0x762   :  { %v851_v26 = vpop.xlane.xlu0 %850 }
 0x763   :  { %3102 = vpow2.f32 %v854_v25  ;;  %v853_v27 = vsub.f32 %v845_v21, %v851_v26  ;;  %v247_v21 = vld [vmem:[%s3760_s6 + $0x18] sm:$0xff]  ;;  %v250_v25 = vld [vmem:[%s3761_s7 + $0x10] sm:$0xff]  ;;  %v2990_v26 = vpack.c.bf16 %v249_v24, %v248_v23  ;;  %v1255_v24 = vsub.s32 5, %v3254_v7 }
 0x764   :  { %v2986_v22 = vpack.c.bf16 %v247_v21, %v246_v19 }
 0x765   :  { %v856_v6 = vmul.f32 1.442695, %v853_v27  ;;  %v251_v27 = vld [vmem:[%s3761_s7 + $0x18] sm:$0xff] }
 0x767   :  { %3104 = vpow2.f32 %v856_v6  ;;  %v2994_v6 = vpack.c.bf16 %v251_v27, %v250_v25  ;;  %v1256_v25 = vrot.slane %v3325_v0, %v1255_v24 }
 0x76d   :  { %v3103_v29 = vpop.eup %3102 }
 0x76e   :  { %v858_v30 = vsel %vm509_vm8, %v3103_v29, 0.0 }
 0x76f   :  { %859 = vadd.xlane.f32.xlu0 %v858_v30  ;;  %v253_v30 = vld [vmem:[%s3761_s7 + $0x28] sm:$0xff] }
 0x771   :  { %v3105_v31 = vpop.eup %3104 }
 0x772   :  { %v861_v32 = vsel %vm509_vm8, %v3105_v31, 0.0 }
 0x773   :  { %862 = vadd.xlane.f32.xlu1 %v861_v32 }
 0x784   :  { %944 = vrot.lane.b32.xlu1 %v3333_v8, %s3181_s22  ;;  %v241_v8 = vld [vmem:[%s3759_s5 + $0x8] sm:$0xff] }
 0x785   :  { %868 = vrot.lane.b32.xlu0 %v3329_v4, %s3181_s22  ;;  %v240_v4 = vld [vmem:[%s3759_s5] sm:$0xff] }
 0x786   :  { %v2974_v41 = vpack.c.bf16 %v241_v8, %v240_v4 }
 0x7fc   :  { %v860_v33 = vpop.xlane.xlu0 %859 }
 0x7fd   :  { %3106 = vrcp.f32 %v860_v33 }
 0x800   :  { %v863_v34 = vpop.xlane.xlu1 %862  ;;  %v869_v35 = vpop.permute.xlu0 %868 }
 0x801   :  { %3108 = vrcp.f32 %v863_v34  ;;  %2776 = vmatpush3.msra.mxu0 %v869_v35 }
 0x802   :  { %2975 = vmatprep.subr.bf16.mxu0 %v2974_v41 }
 0x804   :  { %v945_v36 = vpop.permute.xlu1 %944 }
 0x805   :  { %2781 = vmatpush3.msra.mxu1 %v945_v36 }
 0x807   :  { %v3107_v37 = vpop.eup %3106 }
 0x808   :  { %v866_v38 = vmul.f32 %v3107_v37, %v3103_v29  ;;  %v252_v29 = vld [vmem:[%s3761_s7 + $0x20] sm:$0xff] }
 0x80a   :  { %2778 = vmatmul.mubr.msk.f32.vlgmr.msra.gmra.mrb[4].mxu0 %vm509_vm8, %v866_v38  ;;  %v1148_v38 = vsub.s32 2, %v3254_v7 }
 0x80b   :  { %v3109_v39 = vpop.eup %3108  ;;  %2977 = vmatpush3.bf16.msra.mxu0 %v2974_v41 }
 0x80c   :  { %v867_v40 = vmul.f32 %v3109_v39, %v3105_v31  ;;  %2979 = vmatprep.subr.bf16.mxu0 %v2978_v44  ;;  %v2998_v31 = vpack.c.bf16 %v253_v30, %v252_v29  ;;  %v1154_v39 = vsub.s32 3, %v3254_v7 }
 0x80e   :  { %2783 = vmatmul.mubr.msk.f32.vlgmr.msra.gmra.mrb[12].mxu1 %vm509_vm8, %v867_v40  ;;  %v1149_v40 = vrot.slane %v3325_v0, %v1148_v38  ;;  %v1155_v43 = vrot.slane %v3325_v0, %v1154_v39 }
 0x80f   :  { %2981 = vmatpush3.bf16.msra.mxu0 %v2978_v44 }
 0x810   :  { %2991 = vmatprep.subr.bf16.mxu0 %v2990_v26 }
 0x8dd   :  { %v940_v45 = vpop.f32.mrb[4].mxu0 }
 0x8de   :  { %1022 = vrot.lane.b32.xlu1 %v940_v45, %s3182_s28  ;;  %v2779_v46 = vpop.f32.mrb[5].mxu0 }
 0x8e1   :  { %v1016_v47 = vpop.f32.mrb[12].mxu1 }
 0x8e2   :  { %1024 = vrot.lane.b32.xlu0 %v1016_v47, %s3182_s28  ;;  %v2784_v48 = vpop.f32.mrb[13].mxu1 }
 0x8e3   :  { %v254_v48 = vld [vmem:[%s3761_s7 + $0x30] sm:$0xff] }
 0x950   :  { %v1023_v49 = vpop.permute.xlu1 %1022 }
 0x951   :  { %1029 = vst.msk [vmem:[#allocation2] sm:$0xff] %vm1028_vm9, %v1023_v49  ;;  %v255_v49 = vld [vmem:[%s3761_s7 + $0x38] sm:$0xff] }
 0x954   :  { %v1025_v50 = vpop.permute.xlu0 %1024 }
 0x955   :  { %1030 = vst.msk [vmem:[#allocation2 + $0x8] sm:$0xff] %vm1028_vm9, %v1025_v50  ;;  %v3002_v50 = vpack.c.bf16 %v255_v49, %v254_v48  ;;  %v2557_v48 = vld [vmem:[%s3758_s4 + $0x38] sm:$0xff] }
 0x958   :  { %v1031_v51 = vld [vmem:[#allocation2] sm:$0xff] }
 0x959   :  { %2793 = vmatprep.mubr.msk.f32.mxu0 %vm196_vm3, %v1031_v51  ;;  %v256_v51 = vld [vmem:[%s3761_s7 + $0x40] sm:$0xff] }
 0x95c   :  { %v1032_v52 = vld [vmem:[#allocation2 + $0x8] sm:$0xff] }
 0x95d   :  { %2794 = vmatmul.mubr.msk.f32.vlgmr.msra.gmra.mrb[6].mxu0 %vm196_vm3, %v1032_v52  ;;  %v257_v52 = vld [vmem:[%s3761_s7 + $0x48] sm:$0xff] }
 0x95e   :  { %2993 = vmatpush3.bf16.msra.mxu0 %v2990_v26 }
 0x95f   :  { %2995 = vmatprep.subr.bf16.mxu0 %v2994_v6 }
 0x962   :  { %2997 = vmatpush3.bf16.msra.mxu0 %v2994_v6 }
 0x963   :  { %2999 = vmatprep.subr.bf16.mxu0 %v2998_v31 }
 0x966   :  { %3001 = vmatpush3.bf16.msra.mxu0 %v2998_v31 }
 0x967   :  { %3003 = vmatprep.subr.bf16.mxu0 %v3002_v50 }
 0x96a   :  { %3005 = vmatpush3.bf16.msra.mxu0 %v3002_v50 }
 0xa30   :  { %v2795_v54 = vpop.f32.mrb[6].mxu0 }
 0xa31   :  { %v1115_v55 = vadd.f32 %v2795_v54, %v1036_v53  ;;  %v1109_v56 = vpop.f32.mrb[7].mxu0  ;;  %v258_v54 = vld [vmem:[%s3761_s7 + $0x50] sm:$0xff] }
 0xa32   :  { %v1110_v57 = vadd.f32 %v1109_v56, %v1036_v53  ;;  %v3006_v53 = vpack.c.bf16 %v257_v52, %v256_v51 }
 0xa33   :  { %v1119_v58 = vadd.f32 %v1115_v55, %v3314_v63  ;;  %v259_v55 = vld [vmem:[%s3761_s7 + $0x58] sm:$0xff] }
 0xa34   :  { %v1118_v59 = vadd.f32 %v1110_v57, %v3310_v61  ;;  %v244_v61 = vld [vmem:[%s3760_s6] sm:$0xff]  ;;  %3007 = vmatprep.subr.bf16.mxu0 %v3006_v53  ;;  %v3010_v56 = vpack.c.bf16 %v259_v55, %v258_v54 }
 0xa35   :  { %v1123_v60 = vsel %vm196_vm3, %v1119_v58, 0.0  ;;  %v2982_v18 = vpack.c.bf16 %v245_v17, %v244_v61  ;;  %3009 = vmatpush3.bf16.msra.mxu0 %v3006_v53  ;;  %v260_v57 = vld [vmem:[%s3761_s7 + $0x60] sm:$0xff] }
 0xa36   :  { %1124 = vadd.xlane.f32.xlu0 %v1123_v60  ;;  %v1120_v62 = vsel %vm196_vm3, %v1118_v59, 0.0  ;;  %3011 = vmatprep.subr.bf16.mxu0 %v3010_v56  ;;  %v262_v60 = vld [vmem:[%s3761_s7 + $0x70] sm:$0xff] }
 0xa37   :  { %1121 = vadd.xlane.f32.xlu1 %v1120_v62  ;;  %2983 = vmatprep.subr.bf16.mxu1 %v2982_v18  ;;  %v263_v62 = vld [vmem:[%s3761_s7 + $0x78] sm:$0xff] }
 0xa38   :  { %2985 = vmatpush3.bf16.msra.mxu1 %v2982_v18 }
 0xa39   :  { %2987 = vmatprep.subr.bf16.mxu1 %v2986_v22  ;;  %3013 = vmatpush3.bf16.msra.mxu0 %v3010_v56  ;;  %v1362_v56 = vsub.s32 6, %v3254_v7 }
 0xa3c   :  { %2989 = vmatpush3.bf16.msra.mxu1 %v2986_v22 }
 0xac3   :  { %v1125_v1 = vpop.xlane.xlu0 %1124 }
 0xac4   :  { %v1127_v2 = vmul.f32 0.03125, %v1125_v1  ;;  %v1122_v3 = vpop.xlane.xlu1 %1121  ;;  %v3018_v1 = vpack.c.bf16 %v263_v62, %v262_v60 }
 0xac5   :  { %v1126_v9 = vmul.f32 0.03125, %v1122_v3 }
 0xac6   :  { %v1129_v10 = vsub.f32 %v1119_v58, %v1127_v2  ;;  %v261_v58 = vld [vmem:[%s3761_s7 + $0x68] sm:$0xff]  ;;  %v1160_v2 = vsub.s32 4, %v3254_v7 }
 0xac7   :  { %v1128_v11 = vsub.f32 %v1118_v59, %v1126_v9  ;;  %v3014_v59 = vpack.c.bf16 %v261_v58, %v260_v57  ;;  %v1368_v57 = vsub.s32 7, %v3254_v7  ;;  %v1363_v58 = vrot.slane %v3325_v0, %v1362_v56 }
 0xac8   :  { %v1131_v14 = vmul.f32 %v1129_v10, %v1129_v10  ;;  %v1161_v3 = vrot.slane %v3325_v0, %v1160_v2 }
 0xac9   :  { %v1130_v15 = vmul.f32 %v1128_v11, %v1128_v11  ;;  %3015 = vmatprep.subr.bf16.mxu0 %v3014_v59 }
 0xaca   :  { %v1135_v16 = vsel %vm196_vm3, %v1131_v14, 0.0  ;;  %3017 = vmatpush3.bf16.msra.mxu0 %v3014_v59 }
 0xacb   :  { %1136 = vadd.xlane.f32.xlu1 %v1135_v16  ;;  %v1132_v63 = vsel %vm196_vm3, %v1130_v15, 0.0  ;;  %3019 = vmatprep.subr.bf16.mxu0 %v3018_v1 }
 0xacc   :  { %1133 = vadd.xlane.f32.xlu0 %v1132_v63 }
 0xace   :  { %3021 = vmatpush3.bf16.msra.mxu0 %v3018_v1 }
 0xacf   :  { %2883 = vmatprep.subr.mxu0 %v3174_v5 }
 0xb58   :  { %v1137_v32 = vpop.xlane.xlu1 %1136 }
 0xb59   :  { %v1139_v33 = vmul.f32 0.03125, %v1137_v32  ;;  %v1134_v34 = vpop.xlane.xlu0 %1133 }
 0xb5a   :  { %v1138_v35 = vmul.f32 0.03125, %v1134_v34 }
 0xb5b   :  { %v1141_v36 = vadd.f32 1e-12, %v1139_v33 }
 0xb5c   :  { %v1140_v37 = vadd.f32 1e-12, %v1138_v35 }
 0xb5d   :  { %3110 = vrsqrt.f32 %v1141_v36 }
 0xb5e   :  { %3112 = vrsqrt.f32 %v1140_v37 }
 0xb67   :  { %v3111_v4 = vpop.eup %3110 }
 0xb68   :  { %v3113_v8 = vpop.eup %3112  ;;  %v1145_v41 = vmul.f32 %v3111_v4, %v1129_v10 }
 0xb69   :  { %v1144_v42 = vmul.f32 %v3113_v8, %v1128_v11 }
 0xb6a   :  { %v1151_v44 = vmul.f32 %v1149_v40, %v1145_v41 }
 0xb6b   :  { %v1150_v45 = vmul.f32 %v1149_v40, %v1144_v42 }
 0xb6c   :  { %v1157_v47 = vadd.f32 %v1155_v43, %v1151_v44  ;;  %v2554_v44 = vld [vmem:[%s3758_s4 + $0x20] sm:$0xff] }
 0xb6d   :  { %v1156_v46 = vadd.f32 %v1155_v43, %v1150_v45  ;;  %v2555_v45 = vld [vmem:[%s3758_s4 + $0x28] sm:$0xff] }
 0xb6f   :  { %2804 = vmatprep.mubr.msk.f32.mxu1 %vm196_vm3, %v1156_v46 }
 0xb70   :  { %2805 = vmatmul.mubr.msk.f32.vlgmr.msra.gmra.mrb[14].mxu1 %vm196_vm3, %v1157_v47 }
 0xc43   :  { %v2806_v9 = vpop.f32.mrb[14].mxu1 }
 0xc44   :  { %v1240_v10 = vadd.f32 %v2806_v9, %v1161_v3  ;;  %v1234_v11 = vpop.f32.mrb[15].mxu1 }
 0xc45   :  { %v1235_v14 = vadd.f32 %v1234_v11, %v1161_v3  ;;  %v1369_v3 = vrot.slane %v3325_v0, %v1368_v57 }
 0xc46   :  { %v1246_v15 = vmul.f32 0.70710677, %v1240_v10  ;;  %v1244_v21 = vmul.f32 0.5, %v1240_v10 }
 0xc47   :  { %v1245_v16 = vmul.f32 0.70710677, %v1235_v14  ;;  %v1243_v18 = vmul.f32 0.5, %v1235_v14 }
 0xc48   :  { %3114 = verf.f32 %v1246_v15  ;;  %v3556_v15 = vld [vmem:[%s3762_s8 + $0x8] sm:$0xff] }
 0xc49   :  { %3116 = verf.f32 %v1245_v16  ;;  %v1409_v0 = vrot.slane %v3556_v15, %v3263_v12 }
 0xc52   :  { %v3115_v63 = vpop.eup %3114 }
 0xc53   :  { %v3117_v61 = vpop.eup %3116  ;;  %v1250_v17 = vadd.f32 1.0, %v3115_v63 }
 0xc54   :  { %v1249_v19 = vadd.f32 1.0, %v3117_v61 }
 0xc55   :  { %v1252_v23 = vmul.f32 %v1250_v17, %v1244_v21 }
 0xc56   :  { %v1251_v22 = vmul.f32 %v1249_v19, %v1243_v18 }
 0xc58   :  { %2839 = vmatprep.mubr.f32.mxu0 %v1251_v22 }
 0xc59   :  { %2840 = vmatmul.mubr.f32.vlgmr.msra.gmra.mrb[8].mxu0 %v1252_v23 }
 0xc5a   :  { %2885 = vmatprep.mubr.msk.f32.mxu0 %vm3175_vm4, %v3174_v5 }
 0xd2c   :  { %v2841_v26 = vpop.f32.mrb[8].mxu0 }
 0xd2d   :  { %v1329_v27 = vadd.f32 %v2841_v26, %v1256_v25  ;;  %v1323_v6 = vpop.f32.mrb[9].mxu0 }
 0xd2e   :  { %v1324_v29 = vadd.f32 %v1323_v6, %v1256_v25 }
 0xd2f   :  { %v1333_v30 = vadd.f32 %v1329_v27, %v1157_v47  ;;  %v2556_v47 = vld [vmem:[%s3758_s4 + $0x30] sm:$0xff] }
 0xd30   :  { %v1332_v31 = vadd.f32 %v1324_v29, %v1156_v46  ;;  %v3022_v46 = vpack.c.bf16 %v2555_v45, %v2554_v44  ;;  %v3026_v49 = vpack.c.bf16 %v2557_v48, %v2556_v47 }
 0xd31   :  { %v1337_v32 = vsel %vm196_vm3, %v1333_v30, 0.0 }
 0xd32   :  { %1338 = vadd.xlane.f32.xlu1 %v1337_v32  ;;  %v1334_v33 = vsel %vm196_vm3, %v1332_v31, 0.0  ;;  %3023 = vmatprep.subr.bf16.mxu1 %v3022_v46 }
 0xd33   :  { %1335 = vadd.xlane.f32.xlu0 %v1334_v33  ;;  %3025 = vmatpush3.bf16.msra.mxu1 %v3022_v46 }
 0xd34   :  { %3027 = vmatprep.subr.bf16.mxu1 %v3026_v49 }
 0xd37   :  { %3029 = vmatpush3.bf16.msra.mxu1 %v3026_v49 }
 0xd38   :  { %2853 = vmatprep.subr.mxu1 %v3174_v5 }
 0xdbf   :  { %v1339_v34 = vpop.xlane.xlu1 %1338 }
 0xdc0   :  { %v1341_v35 = vmul.f32 0.03125, %v1339_v34  ;;  %v1336_v36 = vpop.xlane.xlu0 %1335 }
 0xdc1   :  { %v1340_v37 = vmul.f32 0.03125, %v1336_v36 }
 0xdc2   :  { %v1343_v40 = vsub.f32 %v1333_v30, %v1341_v35 }
 0xdc3   :  { %v1342_v4 = vsub.f32 %v1332_v31, %v1340_v37 }
 0xdc4   :  { %v1345_v8 = vmul.f32 %v1343_v40, %v1343_v40 }
 0xdc5   :  { %v1344_v41 = vmul.f32 %v1342_v4, %v1342_v4 }
 0xdc6   :  { %v1349_v42 = vsel %vm196_vm3, %v1345_v8, 0.0 }
 0xdc7   :  { %1350 = vadd.xlane.f32.xlu1 %v1349_v42  ;;  %v1346_v43 = vsel %vm196_vm3, %v1344_v41, 0.0 }
 0xdc8   :  { %1347 = vadd.xlane.f32.xlu0 %v1346_v43 }
 0xe54   :  { %v1351_v50 = vpop.xlane.xlu1 %1350 }
 0xe55   :  { %v1353_v51 = vmul.f32 0.03125, %v1351_v50  ;;  %v1348_v52 = vpop.xlane.xlu0 %1347 }
 0xe56   :  { %v1352_v53 = vmul.f32 0.03125, %v1348_v52 }
 0xe57   :  { %v1355_v54 = vadd.f32 1e-12, %v1353_v51 }
 0xe58   :  { %v1354_v55 = vadd.f32 1e-12, %v1352_v53 }
 0xe59   :  { %3118 = vrsqrt.f32 %v1355_v54 }
 0xe5a   :  { %3120 = vrsqrt.f32 %v1354_v55 }
 0xe63   :  { %v3119_v59 = vpop.eup %3118 }
 0xe64   :  { %v3121_v60 = vpop.eup %3120  ;;  %v1359_v62 = vmul.f32 %v3119_v59, %v1343_v40 }
 0xe65   :  { %v1358_v1 = vmul.f32 %v3121_v60, %v1342_v4 }
 0xe66   :  { %v1365_v9 = vmul.f32 %v1363_v58, %v1359_v62 }
 0xe67   :  { %v1364_v10 = vmul.f32 %v1363_v58, %v1358_v1 }
 0xe68   :  { %v3545_v14 = vadd.f32 %v1369_v3, %v1365_v9 }
 0xe69   :  { %v3543_v11 = vadd.f32 %v1369_v3, %v1364_v10 }
 0xe6b   :  { %2850 = vmatprep.mubr.msk.f32.mxu1 %vm196_vm3, %v3543_v11 }
 0xe6c   :  { %2851 = vmatmul.mubr.msk.f32.vlgmr.msra.gmra.mrb[16].mxu1 %vm196_vm3, %v3545_v14 }
 0xe6d   :  { %2855 = vmatprep.mubr.msk.f32.mxu1 %vm3175_vm4, %v3174_v5 }
 0xf3f   :  { %v2852_v16 = vpop.f32.mrb[16].mxu1 }
 0xf40   :  { %v3560_v63 = vadd.f32 %v2852_v16, %v1409_v0  ;;  %v1482_v61 = vpop.f32.mrb[17].mxu1 }
 0xf41   :  { %v3562_v17 = vadd.f32 %v1482_v61, %v1409_v0 }
 0xf42   :  { %1569 = vrot.lane.b32.xlu1 %v3560_v63, %s3176_s18 }
 0xf43   :  { %1492 = vrot.lane.b32.xlu0 %v3562_v17, %s3176_s18 }
 0xfb4   :  { %v1570_v19 = vpop.permute.xlu1 %1569 }
 0xfb5   :  { %v1493_v18 = vpop.permute.xlu0 %1492 }
 0xfb6   :  { %2854 = vmatpush3.xpose.msk.msra.mxu1 %vm353_vm5, %v1493_v18 }
 0xfb7   :  { %2858 = vmatprep.subr.mxu1 %v3174_v5 }
 0xfb9   :  { %2856 = vmatmul.mubr.msk.f32.vlgmr.msra.gmra.mrb[18].mxu1 %vm353_vm5, %v3562_v17 }
 0xfba   :  { %2859 = vmatpush3.xpose.msk.msra.mxu1 %vm353_vm5, %v1570_v19  ;;  %2860 = vmatprep.mubr.msk.f32.mxu1 %vm3175_vm4, %v3174_v5 }
 0xfbb   :  { %2863 = vmatprep.subr.mxu1 %v3174_v5 }
 0xfbd   :  { %2861 = vmatmul.mubr.msk.f32.vlgmr.msra.gmra.mrb[20].mxu1 %vm353_vm5, %v3560_v63 }
 0xfbe   :  { %2865 = vmatprep.mubr.msk.f32.mxu1 %vm3175_vm4, %v3174_v5 }
0x108c   :  { %v1564_v12 = vpop.f32.mrb[18].mxu1 }
0x108d   :  { %v1645_v21 = vmul.f32 0.25, %v1564_v12  ;;  %v2857_v22 = vpop.f32.mrb[19].mxu1 }
0x108f   :  { %v1647_v23 = vadd.f32 %v1645_v21, %v3357_v28 }
0x1090   :  { %v1641_v25 = vpop.f32.mrb[20].mxu1 }
0x1091   :  { %v1646_v26 = vmul.f32 0.25, %v1641_v25  ;;  %v2862_v27 = vpop.f32.mrb[21].mxu1  ;;  %v1649_v6 = vsel %vm509_vm8, %v1647_v23, -inf }
0x1092   :  { %1650 = vmax.xlane.f32.xlu1 %v1649_v6 }
0x1093   :  { %v1648_v29 = vadd.f32 %v1646_v26, %v3360_v20 }
0x1095   :  { %v1652_v30 = vsel %vm509_vm8, %v1648_v29, -inf }
0x1096   :  { %1653 = vmax.xlane.f32.xlu0 %v1652_v30 }
0x10a3   :  { %1747 = vrot.lane.b32.xlu1 %v3560_v63, %s3178_s19 }
0x10a7   :  { %1827 = vrot.lane.b32.xlu1 %v3562_v17, %s3179_s20 }
0x111f   :  { %v1651_v31 = vpop.xlane.xlu1 %1650 }
0x1120   :  { %v1655_v32 = vsub.f32 %v1647_v23, %v1651_v31 }
0x1122   :  { %v1657_v33 = vmul.f32 1.442695, %v1655_v32 }
0x1123   :  { %v1654_v34 = vpop.xlane.xlu0 %1653  ;;  %v1748_v41 = vpop.permute.xlu1 %1747 }
0x1124   :  { %3122 = vpow2.f32 %v1657_v33  ;;  %v1656_v35 = vsub.f32 %v1648_v29, %v1654_v34 }
0x1126   :  { %v1659_v36 = vmul.f32 1.442695, %v1656_v35  ;;  %v2560_v35 = vld [vmem:[%s3759_s5 + $0x30] sm:$0xff] }
0x1127   :  { %v1828_v42 = vpop.permute.xlu1 %1827 }
0x1128   :  { %3124 = vpow2.f32 %v1659_v36  ;;  %v2561_v36 = vld [vmem:[%s3759_s5 + $0x38] sm:$0xff] }
0x112e   :  { %v3123_v37 = vpop.eup %3122 }
0x112f   :  { %v1661_v40 = vsel %vm509_vm8, %v3123_v37, 0.0 }
0x1130   :  { %1662 = vadd.xlane.f32.xlu0 %v1661_v40 }
0x1132   :  { %v3125_v4 = vpop.eup %3124 }
0x1133   :  { %v1664_v8 = vsel %vm509_vm8, %v3125_v4, 0.0 }
0x1134   :  { %1665 = vadd.xlane.f32.xlu1 %v1664_v8 }
0x1145   :  { %1905 = vrot.lane.b32.xlu1 %v3560_v63, %s3179_s20 }
0x1146   :  { %1671 = vrot.lane.b32.xlu0 %v3562_v17, %s3178_s19 }
0x114a   :  { %1825 = vrot.lane.b32.xlu0 %v3562_v17, %s3180_s21 }
0x114e   :  { %1903 = vrot.lane.b32.xlu0 %v3560_v63, %s3180_s21 }
0x11bd   :  { %v1663_v43 = vpop.xlane.xlu0 %1662 }
0x11be   :  { %3126 = vrcp.f32 %v1663_v43 }
0x11c1   :  { %v1666_v44 = vpop.xlane.xlu1 %1665  ;;  %v1672_v45 = vpop.permute.xlu0 %1671 }
0x11c2   :  { %3128 = vrcp.f32 %v1666_v44  ;;  %2864 = vmatpush3.msra.mxu1 %v1672_v45 }
0x11c3   :  { %2868 = vmatprep.subr.mxu1 %v3174_v5 }
0x11c5   :  { %v1826_v50 = vpop.permute.xlu0 %1825  ;;  %v1906_v51 = vpop.permute.xlu1 %1905 }
0x11c8   :  { %v3127_v46 = vpop.eup %3126 }
0x11c9   :  { %v1669_v47 = vmul.f32 %v3127_v46, %v3123_v37  ;;  %v1904_v52 = vpop.permute.xlu0 %1903  ;;  %v3034_v37 = vpack.c.bf16 %v2561_v36, %v2560_v35  ;;  %v2174_v46 = vrot.slane %v3556_v15, %v3266_v13  ;;  %v2293_v35 = vrot.slane %v3556_v15, %v1154_v39  ;;  %v2574_v39 = vld [vmem:[%s3761_s7 + $0xc0] sm:$0xff] }
0x11cb   :  { %2866 = vmatmul.mubr.msk.f32.vlgmr.msra.gmra.mrb[22].mxu1 %vm509_vm8, %v1669_v47 }
0x11cc   :  { %v3129_v48 = vpop.eup %3128  ;;  %2869 = vmatpush3.msra.mxu1 %v1748_v41  ;;  %2870 = vmatprep.mubr.msk.f32.mxu1 %vm3175_vm4, %v3174_v5 }
0x11cd   :  { %v1670_v49 = vmul.f32 %v3129_v48, %v3125_v4  ;;  %2873 = vmatprep.subr.mxu1 %v3174_v5 }
0x11cf   :  { %2871 = vmatmul.mubr.msk.f32.vlgmr.msra.gmra.mrb[24].mxu1 %vm509_vm8, %v1670_v49 }
0x11d0   :  { %2875 = vmatprep.mubr.msk.f32.mxu1 %vm3175_vm4, %v3174_v5 }
0x11d3   :  { %2874 = vmatpush3.xpose.msk.msra.mxu1 %vm353_vm5, %v1828_v42 }
0x11d4   :  { %2878 = vmatprep.subr.mxu1 %v3174_v5 }
0x11d6   :  { %2876 = vmatmul.mubr.msk.f32.vlgmr.msra.gmra.mrb[26].mxu1 %vm353_vm5, %v1826_v50 }
0x11d7   :  { %2879 = vmatpush3.xpose.msk.msra.mxu1 %vm353_vm5, %v1906_v51  ;;  %2880 = vmatprep.mubr.msk.f32.mxu1 %vm3175_vm4, %v3174_v5 }
0x11d8   :  { %2888 = vmatprep.subr.mxu1 %v3174_v5 }
0x11da   :  { %2881 = vmatmul.mubr.msk.f32.vlgmr.msra.gmra.mrb[28].mxu1 %vm353_vm5, %v1904_v52 }
0x11db   :  { %2890 = vmatprep.mubr.msk.f32.mxu1 %vm3175_vm4, %v3174_v5 }
0x129e   :  { %v1743_v53 = vpop.f32.mrb[22].mxu1 }
0x129f   :  { %1823 = vst.msk [vmem:[#allocation2] sm:$0xff] %vm353_vm5, %v1743_v53  ;;  %v2867_v54 = vpop.f32.mrb[23].mxu1 }
0x12a2   :  { %v1819_v55 = vpop.f32.mrb[24].mxu1 }
0x12a3   :  { %1824 = vst.msk [vmem:[#allocation2 + $0x8] sm:$0xff] %vm353_vm5, %v1819_v55  ;;  %v2872_v58 = vpop.f32.mrb[25].mxu1 }
0x12a9   :  { %v1899_v59 = vpop.f32.mrb[26].mxu1 }
0x12aa   :  { %v1981_v60 = vmul.f32 0.25, %v1899_v59  ;;  %v2877_v62 = vpop.f32.mrb[27].mxu1 }
0x12ac   :  { %v1983_v1 = vadd.f32 %v1981_v60, %v3357_v28 }
0x12ad   :  { %v1977_v3 = vpop.f32.mrb[28].mxu1 }
0x12ae   :  { %v1982_v9 = vmul.f32 0.25, %v1977_v3  ;;  %v2882_v10 = vpop.f32.mrb[29].mxu1  ;;  %v1985_v0 = vsel %vm509_vm8, %v1983_v1, -inf }
0x12af   :  { %1986 = vmax.xlane.f32.xlu1 %v1985_v0  ;;  %v2563_v10 = vld [vmem:[%s3760_s6 + $0x28] sm:$0xff] }
0x12b0   :  { %v1984_v5 = vadd.f32 %v1982_v9, %v3360_v20 }
0x12b2   :  { %v1988_v16 = vsel %vm509_vm8, %v1984_v5, -inf }
0x12b3   :  { %1989 = vmax.xlane.f32.xlu0 %v1988_v16  ;;  %v2565_v16 = vld [vmem:[%s3760_s6 + $0x38] sm:$0xff] }
0x133c   :  { %v1987_v61 = vpop.xlane.xlu1 %1986 }
0x133d   :  { %v1991_v18 = vsub.f32 %v1983_v1, %v1987_v61 }
0x133f   :  { %v1993_v19 = vmul.f32 1.442695, %v1991_v18  ;;  %v2566_v18 = vld [vmem:[%s3761_s7 + $0x80] sm:$0xff] }
0x1340   :  { %v1990_v12 = vpop.xlane.xlu0 %1989 }
0x1341   :  { %3130 = vpow2.f32 %v1993_v19  ;;  %v1992_v21 = vsub.f32 %v1984_v5, %v1990_v12  ;;  %v2564_v5 = vld [vmem:[%s3760_s6 + $0x30] sm:$0xff]  ;;  %v2567_v19 = vld [vmem:[%s3761_s7 + $0x88] sm:$0xff] }
0x1342   :  { %v3042_v61 = vpack.c.bf16 %v2565_v16, %v2564_v5  ;;  %v2568_v12 = vld [vmem:[%s3761_s7 + $0x90] sm:$0xff] }
0x1343   :  { %v1995_v22 = vmul.f32 1.442695, %v1992_v21  ;;  %v3046_v21 = vpack.c.bf16 %v2567_v19, %v2566_v18 }
0x1345   :  { %3132 = vpow2.f32 %v1995_v22  ;;  %v2569_v22 = vld [vmem:[%s3761_s7 + $0x98] sm:$0xff] }
0x134b   :  { %v3131_v28 = vpop.eup %3130 }
0x134c   :  { %v1997_v23 = vsel %vm509_vm8, %v3131_v28, 0.0 }
0x134d   :  { %1998 = vadd.xlane.f32.xlu0 %v1997_v23  ;;  %v2570_v23 = vld [vmem:[%s3761_s7 + $0xa0] sm:$0xff] }
0x134f   :  { %v3133_v25 = vpop.eup %3132 }
0x1350   :  { %v2000_v26 = vsel %vm509_vm8, %v3133_v25, 0.0 }
0x1351   :  { %2001 = vadd.xlane.f32.xlu1 %v2000_v26 }
0x1362   :  { %2083 = vrot.lane.b32.xlu1 %v3560_v63, %s3181_s22  ;;  %v2558_v63 = vld [vmem:[%s3759_s5 + $0x20] sm:$0xff] }
0x1363   :  { %2007 = vrot.lane.b32.xlu0 %v3562_v17, %s3181_s22  ;;  %v2559_v17 = vld [vmem:[%s3759_s5 + $0x28] sm:$0xff] }
0x1364   :  { %v3030_v34 = vpack.c.bf16 %v2559_v17, %v2558_v63 }
0x13da   :  { %v1999_v20 = vpop.xlane.xlu0 %1998 }
0x13db   :  { %3134 = vrcp.f32 %v1999_v20 }
0x13de   :  { %v2002_v27 = vpop.xlane.xlu1 %2001  ;;  %v2008_v6 = vpop.permute.xlu0 %2007 }
0x13df   :  { %3136 = vrcp.f32 %v2002_v27  ;;  %2884 = vmatpush3.msra.mxu0 %v2008_v6 }
0x13e0   :  { %3031 = vmatprep.subr.bf16.mxu0 %v3030_v34 }
0x13e2   :  { %v2084_v29 = vpop.permute.xlu1 %2083 }
0x13e3   :  { %2889 = vmatpush3.msra.mxu1 %v2084_v29 }
0x13e5   :  { %v3135_v30 = vpop.eup %3134 }
0x13e6   :  { %v2005_v31 = vmul.f32 %v3135_v30, %v3131_v28  ;;  %v3050_v28 = vpack.c.bf16 %v2569_v22, %v2568_v12 }
0x13e8   :  { %2886 = vmatmul.mubr.msk.f32.vlgmr.msra.gmra.mrb[10].mxu0 %vm509_vm8, %v2005_v31 }
0x13e9   :  { %v3137_v32 = vpop.eup %3136  ;;  %3033 = vmatpush3.bf16.msra.mxu0 %v3030_v34 }
0x13ea   :  { %v2006_v33 = vmul.f32 %v3137_v32, %v3133_v25  ;;  %3035 = vmatprep.subr.bf16.mxu0 %v3034_v37  ;;  %v2571_v25 = vld [vmem:[%s3761_s7 + $0xa8] sm:$0xff]  ;;  %v2287_v32 = vrot.slane %v3556_v15, %v1148_v38  ;;  %v2572_v38 = vld [vmem:[%s3761_s7 + $0xb0] sm:$0xff] }
0x13eb   :  { %v3054_v26 = vpack.c.bf16 %v2571_v25, %v2570_v23 }
0x13ec   :  { %2891 = vmatmul.mubr.msk.f32.vlgmr.msra.gmra.mrb[30].mxu1 %vm509_vm8, %v2006_v33 }
0x13ed   :  { %3037 = vmatpush3.bf16.msra.mxu0 %v3034_v37 }
0x13ee   :  { %3047 = vmatprep.subr.bf16.mxu0 %v3046_v21 }
0x14bb   :  { %v2079_v40 = vpop.f32.mrb[10].mxu0 }
0x14bc   :  { %2161 = vrot.lane.b32.xlu1 %v2079_v40, %s3182_s28  ;;  %v2887_v4 = vpop.f32.mrb[11].mxu0 }
0x14bf   :  { %v2155_v8 = vpop.f32.mrb[30].mxu1 }
0x14c0   :  { %2163 = vrot.lane.b32.xlu0 %v2155_v8, %s3182_s28  ;;  %v2892_v41 = vpop.f32.mrb[31].mxu1  ;;  %v2573_v8 = vld [vmem:[%s3761_s7 + $0xb8] sm:$0xff] }
0x14c1   :  { %v3058_v41 = vpack.c.bf16 %v2573_v8, %v2572_v38 }
0x152e   :  { %v2162_v42 = vpop.permute.xlu1 %2161 }
0x152f   :  { %2167 = vst.msk [vmem:[#allocation2] sm:$0xff] %vm1028_vm9, %v2162_v42  ;;  %v2575_v42 = vld [vmem:[%s3761_s7 + $0xc8] sm:$0xff] }
0x1532   :  { %v2164_v43 = vpop.permute.xlu0 %2163 }
0x1533   :  { %2168 = vst.msk [vmem:[#allocation2 + $0x8] sm:$0xff] %vm1028_vm9, %v2164_v43  ;;  %v3062_v43 = vpack.c.bf16 %v2575_v42, %v2574_v39 }
0x1536   :  { %v2169_v44 = vld [vmem:[#allocation2] sm:$0xff] }
0x1537   :  { %2901 = vmatprep.mubr.msk.f32.mxu0 %vm196_vm3, %v2169_v44  ;;  %v2576_v44 = vld [vmem:[%s3761_s7 + $0xd0] sm:$0xff] }
0x153a   :  { %v2170_v45 = vld [vmem:[#allocation2 + $0x8] sm:$0xff] }
0x153b   :  { %2902 = vmatmul.mubr.msk.f32.vlgmr.msra.gmra.mrb[12].mxu0 %vm196_vm3, %v2170_v45  ;;  %v2577_v45 = vld [vmem:[%s3761_s7 + $0xd8] sm:$0xff] }
0x153c   :  { %3049 = vmatpush3.bf16.msra.mxu0 %v3046_v21 }
0x153d   :  { %3051 = vmatprep.subr.bf16.mxu0 %v3050_v28 }
0x1540   :  { %3053 = vmatpush3.bf16.msra.mxu0 %v3050_v28 }
0x1541   :  { %3055 = vmatprep.subr.bf16.mxu0 %v3054_v26 }
0x1544   :  { %3057 = vmatpush3.bf16.msra.mxu0 %v3054_v26 }
0x1545   :  { %3059 = vmatprep.subr.bf16.mxu0 %v3058_v41 }
0x1548   :  { %3061 = vmatpush3.bf16.msra.mxu0 %v3058_v41 }
0x1549   :  { %3063 = vmatprep.subr.bf16.mxu0 %v3062_v43 }
0x154c   :  { %3065 = vmatpush3.bf16.msra.mxu0 %v3062_v43 }
0x160e   :  { %v2903_v47 = vpop.f32.mrb[12].mxu0 }
0x160f   :  { %v2253_v48 = vadd.f32 %v2903_v47, %v2174_v46  ;;  %v2247_v49 = vpop.f32.mrb[13].mxu0  ;;  %v2578_v47 = vld [vmem:[%s3761_s7 + $0xe0] sm:$0xff] }
0x1610   :  { %v2248_v50 = vadd.f32 %v2247_v49, %v2174_v46  ;;  %v3066_v46 = vpack.c.bf16 %v2577_v45, %v2576_v44 }
0x1611   :  { %v2257_v51 = vadd.f32 %v2253_v48, %v3545_v14  ;;  %v2579_v48 = vld [vmem:[%s3761_s7 + $0xe8] sm:$0xff] }
0x1612   :  { %v2256_v52 = vadd.f32 %v2248_v50, %v3543_v11  ;;  %v2562_v11 = vld [vmem:[%s3760_s6 + $0x20] sm:$0xff]  ;;  %3067 = vmatprep.subr.bf16.mxu0 %v3066_v46  ;;  %v3070_v49 = vpack.c.bf16 %v2579_v48, %v2578_v47  ;;  %v2580_v50 = vld [vmem:[%s3761_s7 + $0xf0] sm:$0xff] }
0x1613   :  { %v2261_v53 = vsel %vm196_vm3, %v2257_v51, 0.0  ;;  %v3038_v0 = vpack.c.bf16 %v2563_v10, %v2562_v11  ;;  %3069 = vmatpush3.bf16.msra.mxu0 %v3066_v46 }
0x1614   :  { %2262 = vadd.xlane.f32.xlu0 %v2261_v53  ;;  %v2258_v54 = vsel %vm196_vm3, %v2256_v52, 0.0  ;;  %3071 = vmatprep.subr.bf16.mxu0 %v3070_v49  ;;  %v2299_v53 = vrot.slane %v3556_v15, %v1160_v2  ;;  %v2394_v2 = vrot.slane %v3556_v15, %v1255_v24 }
0x1615   :  { %2259 = vadd.xlane.f32.xlu1 %v2258_v54  ;;  %3039 = vmatprep.subr.bf16.mxu1 %v3038_v0 }
0x1616   :  { %3041 = vmatpush3.bf16.msra.mxu1 %v3038_v0 }
0x1617   :  { %3043 = vmatprep.subr.bf16.mxu1 %v3042_v61  ;;  %3073 = vmatpush3.bf16.msra.mxu0 %v3070_v49 }
0x161a   :  { %3045 = vmatpush3.bf16.msra.mxu1 %v3042_v61 }
0x16a1   :  { %v2263_v55 = vpop.xlane.xlu0 %2262 }
0x16a2   :  { %v2265_v58 = vmul.f32 0.03125, %v2263_v55  ;;  %v2260_v59 = vpop.xlane.xlu1 %2259 }
0x16a3   :  { %v2264_v60 = vmul.f32 0.03125, %v2260_v59 }
0x16a4   :  { %v2267_v62 = vsub.f32 %v2257_v51, %v2265_v58  ;;  %v2581_v51 = vld [vmem:[%s3761_s7 + $0xf8] sm:$0xff]  ;;  %s3183_s7 = smov [#allocation3]  }
0x16a5   :  { %v2266_v13 = vsub.f32 %v2256_v52, %v2264_v60  ;;  %v3074_v52 = vpack.c.bf16 %v2581_v51, %v2580_v50  ;;  %s2517_s11 = sshll.u32 %s3183_s7, 4  ;;  %s2518_s11 = int_to_ptr.vmem [resolvable:$true] %s2517_s11 }
0x16a6   :  { %v2269_v1 = vmul.f32 %v2267_v62, %v2267_v62  ;;  %s3150_s12 = scalar_lea.vmem %s2518_s11, 256  ;;  %p3155_p1 = scmp.lt.s32.totalorder %s2518_s11, %s2518_s11 }
0x16a7   :  { %v2268_v3 = vmul.f32 %v2266_v13, %v2266_v13  ;;  %3075 = vmatprep.subr.bf16.mxu0 %v3074_v52  ;;  %p3151_p0 = scmp.ne.s32.totalorder %s2518_s11, %s3150_s12  ;;  %p3156_p2 = scmp.lt.s32.totalorder %s3150_s12, %s3150_s12 }
0x16a8   :  { %v2273_v9 = vsel %vm196_vm3, %v2269_v1, 0.0  ;;  %3077 = vmatpush3.bf16.msra.mxu0 %v3074_v52 }
0x16a9   :  { %2274 = vadd.xlane.f32.xlu1 %v2273_v9  ;;  %v2270_v14 = vsel %vm196_vm3, %v2268_v3, 0.0  ;;  %p3157_p3 = por %p3156_p2, %p3155_p1 }
0x16aa   :  { %2271 = vadd.xlane.f32.xlu0 %v2270_v14 }
0x16ab   :  { %p3158_p4 = pnand %p3157_p3, %p3151_p0 }
0x1736   :  { %v2275_v20 = vpop.xlane.xlu1 %2274 }
0x1737   :  { %v2277_v27 = vmul.f32 0.03125, %v2275_v20  ;;  %v2272_v6 = vpop.xlane.xlu0 %2271 }
0x1738   :  { %v2276_v29 = vmul.f32 0.03125, %v2272_v6 }
0x1739   :  { %v2279_v30 = vadd.f32 1e-12, %v2277_v27 }
0x173a   :  { %v2278_v31 = vadd.f32 1e-12, %v2276_v29 }
0x173b   :  { %3138 = vrsqrt.f32 %v2279_v30 }
0x173c   :  { %3140 = vrsqrt.f32 %v2278_v31 }
0x1745   :  { %v3139_v33 = vpop.eup %3138 }
0x1746   :  { %v3141_v63 = vpop.eup %3140  ;;  %v2283_v17 = vmul.f32 %v3139_v33, %v2267_v62 }
0x1747   :  { %v2282_v34 = vmul.f32 %v3141_v63, %v2266_v13 }
0x1748   :  { %v2289_v36 = vmul.f32 %v2287_v32, %v2283_v17 }
0x1749   :  { %v2288_v37 = vmul.f32 %v2287_v32, %v2282_v34 }
0x174a   :  { %v2295_v4 = vadd.f32 %v2293_v35, %v2289_v36 }
0x174b   :  { %v2294_v40 = vadd.f32 %v2293_v35, %v2288_v37  ;;  %v2501_v35 = vrot.slane %v3556_v15, %v1362_v56 }
0x174d   :  { %2912 = vmatprep.mubr.msk.f32.mxu1 %vm196_vm3, %v2294_v40 }
0x174e   :  { %2913 = vmatmul.mubr.msk.f32.vlgmr.msra.gmra.mrb[32].mxu1 %vm196_vm3, %v2295_v4 }
0x1821   :  { %v2914_v54 = vpop.f32.mrb[32].mxu1 }
0x1822   :  { %v2378_v55 = vadd.f32 %v2914_v54, %v2299_v53  ;;  %v2372_v58 = vpop.f32.mrb[33].mxu1 }
0x1823   :  { %v2373_v59 = vadd.f32 %v2372_v58, %v2299_v53 }
0x1824   :  { %v2384_v60 = vmul.f32 0.70710677, %v2378_v55  ;;  %v2382_v11 = vmul.f32 0.5, %v2378_v55 }
0x1825   :  { %v2383_v62 = vmul.f32 0.70710677, %v2373_v59  ;;  %v2381_v9 = vmul.f32 0.5, %v2373_v59 }
0x1826   :  { %3142 = verf.f32 %v2384_v60 }
0x1827   :  { %3144 = verf.f32 %v2383_v62 }
0x1830   :  { %v3143_v13 = vpop.eup %3142 }
0x1831   :  { %v3145_v1 = vpop.eup %3144  ;;  %v2388_v3 = vadd.f32 1.0, %v3143_v13 }
0x1832   :  { %v2387_v14 = vadd.f32 1.0, %v3145_v1 }
0x1833   :  { %v2390_v0 = vmul.f32 %v2388_v3, %v2382_v11 }
0x1834   :  { %v2389_v10 = vmul.f32 %v2387_v14, %v2381_v9 }
0x1836   :  { %2947 = vmatprep.mubr.f32.mxu0 %v2389_v10 }
0x1837   :  { %2948 = vmatmul.mubr.f32.vlgmr.msra.gmra.mrb[14].mxu0 %v2390_v0 }
0x190a   :  { %v2949_v5 = vpop.f32.mrb[14].mxu0 }
0x190b   :  { %v2467_v16 = vadd.f32 %v2949_v5, %v2394_v2  ;;  %v2461_v61 = vpop.f32.mrb[15].mxu0 }
0x190c   :  { %v2462_v18 = vadd.f32 %v2461_v61, %v2394_v2 }
0x190d   :  { %v2471_v19 = vadd.f32 %v2467_v16, %v2295_v4  ;;  %v2507_v4 = vrot.slane %v3556_v15, %v1368_v57 }
0x190e   :  { %v2470_v12 = vadd.f32 %v2462_v18, %v2294_v40 }
0x190f   :  { %v2475_v21 = vsel %vm196_vm3, %v2471_v19, 0.0 }
0x1910   :  { %2476 = vadd.xlane.f32.xlu1 %v2475_v21  ;;  %v2472_v22 = vsel %vm196_vm3, %v2470_v12, 0.0 }
0x1911   :  { %2473 = vadd.xlane.f32.xlu0 %v2472_v22 }
0x199d   :  { %v2477_v28 = vpop.xlane.xlu1 %2476 }
0x199e   :  { %v2479_v23 = vmul.f32 0.03125, %v2477_v28  ;;  %v2474_v25 = vpop.xlane.xlu0 %2473 }
0x199f   :  { %v2478_v26 = vmul.f32 0.03125, %v2474_v25 }
0x19a0   :  { %v2481_v20 = vsub.f32 %v2471_v19, %v2479_v23 }
0x19a1   :  { %v2480_v27 = vsub.f32 %v2470_v12, %v2478_v26 }
0x19a2   :  { %v2483_v6 = vmul.f32 %v2481_v20, %v2481_v20 }
0x19a3   :  { %v2482_v24 = vmul.f32 %v2480_v27, %v2480_v27 }
0x19a4   :  { %v2487_v29 = vsel %vm196_vm3, %v2483_v6, 0.0 }
0x19a5   :  { %2488 = vadd.xlane.f32.xlu1 %v2487_v29  ;;  %v2484_v30 = vsel %vm196_vm3, %v2482_v24, 0.0 }
0x19a6   :  { %2485 = vadd.xlane.f32.xlu0 %v2484_v30 }
0x1a32   :  { %v2489_v31 = vpop.xlane.xlu1 %2488 }
0x1a33   :  { %v2491_v32 = vmul.f32 0.03125, %v2489_v31  ;;  %v2486_v33 = vpop.xlane.xlu0 %2485 }
0x1a34   :  { %v2490_v63 = vmul.f32 0.03125, %v2486_v33 }
0x1a35   :  { %v2493_v17 = vadd.f32 1e-12, %v2491_v32 }
0x1a36   :  { %v2492_v34 = vadd.f32 1e-12, %v2490_v63 }
0x1a37   :  { %3146 = vrsqrt.f32 %v2493_v17 }
0x1a38   :  { %3148 = vrsqrt.f32 %v2492_v34 }
0x1a41   :  { %v3147_v36 = vpop.eup %3146 }
0x1a42   :  { %v3149_v37 = vpop.eup %3148  ;;  %v2497_v40 = vmul.f32 %v3147_v36, %v2481_v20 }
0x1a43   :  { %v2496_v38 = vmul.f32 %v3149_v37, %v2480_v27 }
0x1a44   :  { %v2503_v8 = vmul.f32 %v2501_v35, %v2497_v40 }
0x1a45   :  { %v2502_v41 = vmul.f32 %v2501_v35, %v2496_v38 }
0x1a46   :  { %v2509_v39 = vadd.f32 %v2507_v4, %v2503_v8 }
0x1a47   :  { %v2508_v42 = vadd.f32 %v2507_v4, %v2502_v41 }
0x1a48   :  { %2511 = vst.msk [vmem:[#allocation3 + $0x8] sm:$0xff] %vm196_vm3, %v2509_v39 }
0x1a49   :  { %2510 = vst.msk [vmem:[#allocation3] sm:$0xff] %vm196_vm3, %v2508_v42 }
0x1a4a   :  { %3161 = shalt.err (!%p3158_p4)
}
0x1a4b   :  { %s3162_s15 = scalar_lea.hbm %s3763_s9, 256 }
0x1a4c   :  { %p3163_p5 = scmp.ne.s32.totalorder %s3763_s9, %s3162_s15  ;;  %p3166_p6 = scmp.lt.u32.totalorder %s3162_s15, %s3763_s9 }
0x1a4e   :  { %p3168_p7 = pnand %p3166_p6, %p3163_p5 }
0x1a50   :  { %3171 = shalt.err (!%p3168_p7)
}
0x1a51   :  { %s3184_s17 = smov 128   ;;  %s3185_s8 = smov 8  }
0x1a52   :  { %2523 = dma.vmem_to_hbm [thread:$0]  %s2518_s11, 256, %s3763_s9, [#allocation4], %s3184_s17, %s3184_s17, %s3185_s8  }
0x1a53   :  { %3172 = dma.done.wait [#allocation4], 256  }
0x1a54   :  { %3173 = vsyncadd [#allocation4], 4294967040 }
0x1a55   :  { %2527 = vsyncpa [#allocation4], 1 }

</bundles_post_ra>
